<compile_context>
chip_gen: v7x
topology: tpu7x:2x2x1
jax: 0.10.0
libtpu: 0.0.40
codegen_flags: <defaults>
</compile_context>

<pallas_src>
import jax
import jax.numpy as jnp
from jax.experimental import pallas as pl
from jax.experimental.pallas import tpu as pltpu


def _conv1x1_kernel(w_ref, x_ref, o_ref):
    # w_ref: (Cout, Cin) bf16  -- weight, already bf16 at rest
    # x_ref: (Cin, HW)  f32    -- activation, cast to bf16 here (hidden under DMA)
    # o_ref: (Cout, HW) f32
    x_bf = x_ref[...].astype(jnp.bfloat16)
    o_ref[...] = jnp.dot(w_ref[...], x_bf, preferred_element_type=jnp.float32)


def prepare_conv1x1_weight(weight_oihw: jax.Array) -> jax.Array:
    """One-time, out-of-hot-path conversion: (Cout, Cin, 1, 1) f32 -> (Cout, Cin) bf16."""
    Cout, Cin = weight_oihw.shape[0], weight_oihw.shape[1]
    return weight_oihw.reshape(Cout, Cin).astype(jnp.bfloat16)


def conv2d_1x1(x_nchw: jax.Array, w_bf16: jax.Array) -> jax.Array:
    """1x1 stride-1 conv, no bias. x_nchw: [1, Cin, H, W] f32, w_bf16: [Cout, Cin] bf16."""
    N, Cin, H, W = x_nchw.shape
    Cout = w_bf16.shape[0]
    assert N == 1, "W@X formulation's zero-transpose reshape assumes N == 1"
    HW = H * W

    # Free (row-major view) reshape: NCHW with N=1 is already (Cin, H*W).
    x_mat = x_nchw.reshape(Cin, HW)

    bytes_accessed = (
        w_bf16.size * w_bf16.dtype.itemsize     # 272*1632*2  ~ 888 KB
        + x_mat.size * x_mat.dtype.itemsize     # 1632*49*4   ~ 320 KB
        + Cout * HW * 4                         # output f32  ~  53 KB
    )

    out_mat = pl.pallas_call(
        _conv1x1_kernel,
        out_shape=jax.ShapeDtypeStruct((Cout, HW), jnp.float32),
        in_specs=[
            pl.BlockSpec(memory_space=pltpu.MemorySpace.VMEM),  # whole weight
            pl.BlockSpec(memory_space=pltpu.MemorySpace.VMEM),  # whole activation
        ],
        out_specs=pl.BlockSpec(memory_space=pltpu.MemorySpace.VMEM),
        cost_estimate=pl.CostEstimate(
            flops=2 * Cout * Cin * HW,
            transcendentals=0,
            bytes_accessed=bytes_accessed,
        ),
    )(w_bf16, x_mat)

    # (Cout, HW) -> (1, Cout, H, W): free view, no transpose.
    return out_mat.reshape(N, Cout, H, W)


if __name__ == "__main__":
    key = jax.random.PRNGKey(0)
    kx, kw = jax.random.split(key)

    # Shapes implied by the module's forward.
    N, Cin, H, W, Cout = 1, 1632, 7, 7, 272

    x425 = jax.random.normal(kx, (N, Cin, H, W), dtype=jnp.float32)
    # Deterministic synthetic weight (kaiming-ish scale), matching
    # Conv2d(1632, 272, kernel_size=1, bias=False).
    weight = jax.random.normal(kw, (Cout, Cin, 1, 1), dtype=jnp.float32) * (1.0 / (Cin ** 0.5))

    # One-time weight prep (outside the hot path).
    w_bf16 = prepare_conv1x1_weight(weight)

    conv = jax.jit(conv2d_1x1)
    out = conv(x425, w_bf16)
    out = jax.block_until_ready(out)
    assert out.shape == (N, Cout, H, W), out.shape

    # Reference 1: same bf16-rounded operands, f32 accumulate -> tight kernel-fidelity check.
    x_bf = x425.astype(jnp.bfloat16).astype(jnp.float32)
    w_bf = weight.reshape(Cout, Cin).astype(jnp.bfloat16).astype(jnp.float32)
    ref_bf = jnp.einsum(
        "nchw,oc->nohw", x_bf.reshape(N, Cin, H, W), w_bf,
        precision=jax.lax.Precision.HIGHEST,
    )
    assert jnp.allclose(out, ref_bf, atol=1e-3, rtol=1e-3), "mismatch vs bf16-input reference"

    # Reference 2: full-f32 conv -> checks we still approximate the original module well.
    # TODO(synk): if bf16 weight/activation precision is not acceptable for the model,
    #             keep both operands f32 (kernel works unchanged with an f32 weight too).
    ref_f32 = jnp.einsum(
        "nchw,oc->nohw", x425, weight.reshape(Cout, Cin),
        precision=jax.lax.Precision.HIGHEST,
    )
    assert jnp.allclose(out, ref_f32, atol=5e-2, rtol=5e-2), "mismatch vs f32 reference"

    print("KERNEL_OK")
</pallas_src>

<mosaic_0001>
module attributes {stable_mosaic.version = 11 : i64} {
  func.func @_conv1x1_kernel(%arg0: memref<272x1632xbf16, #tpu.memory_space<vmem>>, %arg1: memref<1632x49xf32, #tpu.memory_space<vmem>>, %arg2: memref<272x49xf32, #tpu.memory_space<vmem>>) attributes {dimension_semantics = [], scalar_prefetch = 0 : i64, scratch_operands = 0 : i64, tpu.core_type = #tpu.core_type<tc>} {
    %c0 = arith.constant 0 : index
    %c0_0 = arith.constant 0 : index
    %0 = vector.load %arg1[%c0, %c0_0] : memref<1632x49xf32, #tpu.memory_space<vmem>>, vector<1632x49xf32>
    %1 = arith.truncf %0 : vector<1632x49xf32> to vector<1632x49xbf16>
    %c0_1 = arith.constant 0 : index
    %c0_2 = arith.constant 0 : index
    %2 = vector.load %arg0[%c0_1, %c0_2] : memref<272x1632xbf16, #tpu.memory_space<vmem>>, vector<272x1632xbf16>
    %cst = arith.constant dense<0.000000e+00> : vector<272x49xf32>
    %3 = tpu.matmul %2, %1, %cst {dimension_numbers = #tpu.dot_dimension_numbers<[1], [0], [0], [1], [0, 0, 1, 1], [], []>} : vector<272x1632xbf16>, vector<1632x49xbf16>, vector<272x49xf32> -> vector<272x49xf32>
    %c0_3 = arith.constant 0 : index
    %c0_4 = arith.constant 0 : index
    %4 = vector.load %arg2[%c0_3, %c0_4] : memref<272x49xf32, #tpu.memory_space<vmem>>, vector<272x49xf32>
    tpu.vector_store %arg2[%c0_3, %c0_4], %3 {strides = array<i32>} : memref<272x49xf32, #tpu.memory_space<vmem>>, vector<272x49xf32>,
    return
  }
}

</mosaic_0001>

<bundles_post_ra>
// kernel: conv2d_1x1.1
= control target key start
LH: loop header
LB: loop body
LE: loop exit
PB: predicated region body
PF: predicated region fallthrough
CT: control target
= control target key end

     0   :  { %v4008_v0 = vmov 0   ;;  %vm4010_vm0 = vmmov 0   ;;  %vm1661_vm1 = vcmask 785408   ;;  %vm2896_vm2 = vcmask 400384   ;;  %s5676_s1 = inlined_call_operand.vmem [shape: f32[1632,49], index: 1, kind: input, shape index: {}]   ;;  %s5677_s0 = inlined_call_operand.vmem [shape: bf16[272,1632], index: 0, kind: input, shape index: {}]   ;;  %s5678_s2 = inlined_call_operand.vmem [shape: f32[272,49], index: 2, kind: output, shape index: {}]  }
   0x1   :  { %1713 = vmatprep.subr.bf16.mxu1 %v4008_v0  ;;  %2220 = vmatprep.subr.bf16.mxu0 %v4008_v0  ;;  %v12_v1 = vld [vmem:[%s5676_s1] sm:$0xff]  ;;  %v13_v2 = vld [vmem:[%s5676_s1 + $0x8] sm:$0xff]  ;;  %v14_v6 = vld [vmem:[%s5676_s1 + $0x10] sm:$0xff] }
   0x2   :  { %v108_v3 = vld [vmem:[%s5676_s1 + $0x300] sm:$0xff]  ;;  %v216_v4 = vpack.c.bf16 %v13_v2, %v12_v1  ;;  %v109_v5 = vld [vmem:[%s5676_s1 + $0x308] sm:$0xff]  ;;  %v15_v7 = vld [vmem:[%s5676_s1 + $0x18] sm:$0xff] }
   0x3   :  { %v4046_v8 = vpack.c.bf16 %v109_v5, %v108_v3  ;;  %v110_v9 = vld [vmem:[%s5676_s1 + $0x310] sm:$0xff]  ;;  %v111_v10 = vld [vmem:[%s5676_s1 + $0x318] sm:$0xff]  ;;  %v217_v11 = vpack.c.bf16 %v15_v7, %v14_v6  ;;  %v16_v13 = vld [vmem:[%s5676_s1 + $0x20] sm:$0xff] }
   0x4   :  { %1714 = vmatpush1.bf16.msra.mxu1 %v216_v4  ;;  %v4056_v12 = vpack.c.bf16 %v111_v10, %v110_v9  ;;  %v17_v14 = vld [vmem:[%s5676_s1 + $0x28] sm:$0xff]  ;;  %v112_v15 = vld [vmem:[%s5676_s1 + $0x320] sm:$0xff]  ;;  %v18_v19 = vld [vmem:[%s5676_s1 + $0x30] sm:$0xff] }
   0x5   :  { %2221 = vmatpush1.bf16.msra.mxu0 %v4046_v8  ;;  %1715 = vmatprep.subr.bf16.mxu1 %v4008_v0  ;;  %v113_v16 = vld [vmem:[%s5676_s1 + $0x328] sm:$0xff]  ;;  %v218_v17 = vpack.c.bf16 %v17_v14, %v16_v13  ;;  %v19_v20 = vld [vmem:[%s5676_s1 + $0x38] sm:$0xff]  ;;  %v114_v21 = vld [vmem:[%s5676_s1 + $0x330] sm:$0xff] }
   0x6   :  { %2222 = vmatprep.subr.bf16.mxu0 %v4008_v0  ;;  %v4073_v18 = vpack.c.bf16 %v113_v16, %v112_v15  ;;  %v115_v22 = vld [vmem:[%s5676_s1 + $0x338] sm:$0xff]  ;;  %v219_v23 = vpack.c.bf16 %v19_v20, %v18_v19  ;;  %v20_v25 = vld [vmem:[%s5676_s1 + $0x40] sm:$0xff]  ;;  %v21_v26 = vld [vmem:[%s5676_s1 + $0x48] sm:$0xff] }
   0x7   :  { %v4090_v24 = vpack.c.bf16 %v115_v22, %v114_v21  ;;  %v116_v27 = vld [vmem:[%s5676_s1 + $0x340] sm:$0xff]  ;;  %v117_v28 = vld [vmem:[%s5676_s1 + $0x348] sm:$0xff]  ;;  %v220_v29 = vpack.c.bf16 %v21_v26, %v20_v25  ;;  %v22_v31 = vld [vmem:[%s5676_s1 + $0x50] sm:$0xff] }
   0x8   :  { %1716 = vmatpush1.bf16.msra.mxu1 %v217_v11  ;;  %v4107_v30 = vpack.c.bf16 %v117_v28, %v116_v27  ;;  %v23_v32 = vld [vmem:[%s5676_s1 + $0x58] sm:$0xff]  ;;  %v118_v33 = vld [vmem:[%s5676_s1 + $0x350] sm:$0xff]  ;;  %v24_v37 = vld [vmem:[%s5676_s1 + $0x60] sm:$0xff] }
   0x9   :  { %2223 = vmatpush1.bf16.msra.mxu0 %v4056_v12  ;;  %1717 = vmatprep.subr.bf16.mxu1 %v4008_v0  ;;  %v119_v34 = vld [vmem:[%s5676_s1 + $0x358] sm:$0xff]  ;;  %v221_v35 = vpack.c.bf16 %v23_v32, %v22_v31  ;;  %v25_v38 = vld [vmem:[%s5676_s1 + $0x68] sm:$0xff]  ;;  %v120_v39 = vld [vmem:[%s5676_s1 + $0x360] sm:$0xff] }
   0xa   :  { %2224 = vmatprep.subr.bf16.mxu0 %v4008_v0  ;;  %v4124_v36 = vpack.c.bf16 %v119_v34, %v118_v33  ;;  %v121_v40 = vld [vmem:[%s5676_s1 + $0x368] sm:$0xff]  ;;  %v3687_v41 = vld [vmem:[%s5677_s0 + $0x4] ss:$52 sps:$4 sm:$0xff]   ;;  %v222_v42 = vpack.c.bf16 %v25_v38, %v24_v37  ;;  %v3690_v43 = vld [vmem:[%s5677_s0 + $0x1c] ss:$52 sps:$4 sm:$0xff]  }
   0xb   :  { %v4147_v44 = vpack.c.bf16 %v121_v40, %v120_v39  ;;  %v26_v45 = vld [vmem:[%s5676_s1 + $0x70] sm:$0xff]  ;;  %v27_v46 = vld [vmem:[%s5676_s1 + $0x78] sm:$0xff]  ;;  %1745 = vmatprep.mubr.bf16.mxu1 %v3687_v41  ;;  %2252 = vmatprep.mubr.bf16.mxu0 %v3690_v43  ;;  %v28_v51 = vld [vmem:[%s5676_s1 + $0x80] sm:$0xff] }
   0xc   :  { %1718 = vmatpush1.bf16.msra.mxu1 %v218_v17  ;;  %v122_v47 = vld [vmem:[%s5676_s1 + $0x370] sm:$0xff]  ;;  %v123_v48 = vld [vmem:[%s5676_s1 + $0x378] sm:$0xff]  ;;  %v223_v49 = vpack.c.bf16 %v27_v46, %v26_v45  ;;  %v29_v52 = vld [vmem:[%s5676_s1 + $0x88] sm:$0xff] }
   0xd   :  { %2225 = vmatpush1.bf16.msra.mxu0 %v4073_v18  ;;  %1719 = vmatprep.subr.bf16.mxu1 %v4008_v0  ;;  %v4164_v50 = vpack.c.bf16 %v123_v48, %v122_v47  ;;  %v124_v53 = vld [vmem:[%s5676_s1 + $0x380] sm:$0xff]  ;;  %v125_v54 = vld [vmem:[%s5676_s1 + $0x388] sm:$0xff]  ;;  %v224_v55 = vpack.c.bf16 %v29_v52, %v28_v51  ;;  %v30_v57 = vld [vmem:[%s5676_s1 + $0x90] sm:$0xff] }
   0xe   :  { %2226 = vmatprep.subr.bf16.mxu0 %v4008_v0  ;;  %v4181_v56 = vpack.c.bf16 %v125_v54, %v124_v53  ;;  %v31_v58 = vld [vmem:[%s5676_s1 + $0x98] sm:$0xff]  ;;  %v126_v59 = vld [vmem:[%s5676_s1 + $0x390] sm:$0xff]  ;;  %v32_v62 = vld [vmem:[%s5676_s1 + $0xa0] sm:$0xff] }
   0xf   :  { %v127_v60 = vld [vmem:[%s5676_s1 + $0x398] sm:$0xff]  ;;  %v225_v61 = vpack.c.bf16 %v31_v58, %v30_v57  ;;  %v33_v1 = vld [vmem:[%s5676_s1 + $0xa8] sm:$0xff]  ;;  %v128_v2 = vld [vmem:[%s5676_s1 + $0x3a0] sm:$0xff] }
  0x10   :  { %1720 = vmatpush1.bf16.msra.mxu1 %v219_v23  ;;  %v4201_v63 = vpack.c.bf16 %v127_v60, %v126_v59  ;;  %v129_v3 = vld [vmem:[%s5676_s1 + $0x3a8] sm:$0xff]  ;;  %v226_v4 = vpack.c.bf16 %v33_v1, %v32_v62  ;;  %v34_v5 = vld [vmem:[%s5676_s1 + $0xb0] sm:$0xff]  ;;  %v35_v6 = vld [vmem:[%s5676_s1 + $0xb8] sm:$0xff] }
  0x11   :  { %2227 = vmatpush1.bf16.msra.mxu0 %v4090_v24  ;;  %1721 = vmatprep.subr.bf16.mxu1 %v4008_v0  ;;  %v4221_v7 = vpack.c.bf16 %v129_v3, %v128_v2  ;;  %v130_v9 = vld [vmem:[%s5676_s1 + $0x3b0] sm:$0xff]  ;;  %v131_v10 = vld [vmem:[%s5676_s1 + $0x3b8] sm:$0xff]  ;;  %v227_v11 = vpack.c.bf16 %v35_v6, %v34_v5  ;;  %v36_v13 = vld [vmem:[%s5676_s1 + $0xc0] sm:$0xff] }
  0x12   :  { %2228 = vmatprep.subr.bf16.mxu0 %v4008_v0  ;;  %v4235_v14 = vpack.c.bf16 %v131_v10, %v130_v9  ;;  %v37_v15 = vld [vmem:[%s5676_s1 + $0xc8] sm:$0xff]  ;;  %v132_v16 = vld [vmem:[%s5676_s1 + $0x3c0] sm:$0xff]  ;;  %v38_v21 = vld [vmem:[%s5676_s1 + $0xd0] sm:$0xff] }
  0x13   :  { %v133_v17 = vld [vmem:[%s5676_s1 + $0x3c8] sm:$0xff]  ;;  %v228_v19 = vpack.c.bf16 %v37_v15, %v36_v13  ;;  %v39_v22 = vld [vmem:[%s5676_s1 + $0xd8] sm:$0xff]  ;;  %v134_v23 = vld [vmem:[%s5676_s1 + $0x3d0] sm:$0xff] }
  0x14   :  { %1722 = vmatpush1.bf16.msra.mxu1 %v220_v29  ;;  %v4249_v20 = vpack.c.bf16 %v133_v17, %v132_v16  ;;  %v135_v25 = vld [vmem:[%s5676_s1 + $0x3d8] sm:$0xff]  ;;  %v229_v26 = vpack.c.bf16 %v39_v22, %v38_v21  ;;  %v40_v28 = vld [vmem:[%s5676_s1 + $0xe0] sm:$0xff]  ;;  %v41_v29 = vld [vmem:[%s5676_s1 + $0xe8] sm:$0xff] }
  0x15   :  { %2229 = vmatpush1.bf16.msra.mxu0 %v4107_v30  ;;  %1723 = vmatprep.subr.bf16.mxu1 %v4008_v0  ;;  %v4266_v27 = vpack.c.bf16 %v135_v25, %v134_v23  ;;  %v136_v31 = vld [vmem:[%s5676_s1 + $0x3e0] sm:$0xff]  ;;  %v137_v32 = vld [vmem:[%s5676_s1 + $0x3e8] sm:$0xff]  ;;  %v230_v33 = vpack.c.bf16 %v41_v29, %v40_v28  ;;  %v43_v37 = vld [vmem:[%s5676_s1 + $0xf8] sm:$0xff] }
  0x16   :  { %2230 = vmatprep.subr.bf16.mxu0 %v4008_v0  ;;  %v4283_v34 = vpack.c.bf16 %v137_v32, %v136_v31  ;;  %v138_v38 = vld [vmem:[%s5676_s1 + $0x3f0] sm:$0xff]  ;;  %v139_v39 = vld [vmem:[%s5676_s1 + $0x3f8] sm:$0xff]  ;;  %v45_v43 = vld [vmem:[%s5676_s1 + $0x108] sm:$0xff] }
  0x17   :  { %v4300_v41 = vpack.c.bf16 %v139_v39, %v138_v38  ;;  %v140_v45 = vld [vmem:[%s5676_s1 + $0x400] sm:$0xff]  ;;  %v141_v46 = vld [vmem:[%s5676_s1 + $0x408] sm:$0xff]  ;;  %v46_v53 = vld [vmem:[%s5676_s1 + $0x110] sm:$0xff] }
  0x18   :  { %1724 = vmatpush1.bf16.msra.mxu1 %v221_v35  ;;  %v42_v35 = vld [vmem:[%s5676_s1 + $0xf0] sm:$0xff]  ;;  %v3688_v48 = vld [vmem:[%s5677_s0 + $0x18] ss:$52 sps:$4 sm:$0xff]   ;;  %v280_v51 = vpack.c.bf16 %v141_v46, %v140_v45  ;;  %v144_v1 = vld [vmem:[%s5676_s1 + $0x420] sm:$0xff] }
  0x19   :  { %2231 = vmatpush1.bf16.msra.mxu0 %v4124_v36  ;;  %1725 = vmatprep.subr.bf16.mxu1 %v4008_v0  ;;  %v231_v40 = vpack.c.bf16 %v43_v37, %v42_v35  ;;  %v3685_v47 = vld [vmem:[%s5677_s0] ss:$52 sps:$4 sm:$0xff]   ;;  %v47_v54 = vld [vmem:[%s5676_s1 + $0x118] sm:$0xff]  ;;  %v145_v2 = vld [vmem:[%s5676_s1 + $0x428] sm:$0xff] }
  0x1a   :  { %2232 = vmatprep.subr.bf16.mxu0 %v4008_v0  ;;  %v3691_v52 = vld [vmem:[%s5677_s0 + $0x6c] ss:$52 sps:$4 sm:$0xff]   ;;  %v143_v57 = vld [vmem:[%s5676_s1 + $0x418] sm:$0xff]  ;;  %v233_v59 = vpack.c.bf16 %v47_v54, %v46_v53  ;;  %v3697_v5 = vld [vmem:[%s5677_s0 + $0xd4] ss:$52 sps:$4 sm:$0xff]   ;;  %v282_v6 = vpack.c.bf16 %v145_v2, %v144_v1 }
  0x1b   :  { %v3693_v58 = vld [vmem:[%s5677_s0 + $0x84] ss:$52 sps:$4 sm:$0xff]   ;;  %v3696_v62 = vld [vmem:[%s5677_s0 + $0x80] ss:$52 sps:$4 sm:$0xff]   ;;  %v149_v22 = vld [vmem:[%s5676_s1 + $0x448] sm:$0xff] }
  0x1c   :  { %1726 = vmatpush1.bf16.msra.mxu1 %v222_v42  ;;  %v44_v42 = vld [vmem:[%s5676_s1 + $0x100] sm:$0xff]  ;;  %v146_v9 = vld [vmem:[%s5676_s1 + $0x430] sm:$0xff]  ;;  %v51_v16 = vld [vmem:[%s5676_s1 + $0x138] sm:$0xff] }
  0x1d   :  { %2233 = vmatpush1.bf16.msra.mxu0 %v4147_v44  ;;  %1727 = vmatprep.subr.bf16.mxu1 %v4008_v0  ;;  %v48_v3 = vld [vmem:[%s5676_s1 + $0x120] sm:$0xff]  ;;  %v50_v15 = vld [vmem:[%s5676_s1 + $0x130] sm:$0xff]  ;;  %v3702_v25 = vld [vmem:[%s5677_s0 + $0xe8] ss:$52 sps:$4 sm:$0xff]  }
  0x1e   :  { %2234 = vmatprep.subr.bf16.mxu0 %v4008_v0  ;;  %v3699_v10 = vld [vmem:[%s5677_s0 + $0xec] ss:$52 sps:$4 sm:$0xff]   ;;  %v235_v23 = vpack.c.bf16 %v51_v16, %v50_v15  ;;  %v3703_v29 = vld [vmem:[%s5677_s0 + $0x13c] ss:$52 sps:$4 sm:$0xff]   ;;  %v3705_v35 = vld [vmem:[%s5677_s0 + $0x154] ss:$52 sps:$4 sm:$0xff]  }
  0x1f   :  { %v148_v21 = vld [vmem:[%s5676_s1 + $0x440] sm:$0xff]  ;;  %v53_v28 = vld [vmem:[%s5676_s1 + $0x148] sm:$0xff]  ;;  %v150_v32 = vld [vmem:[%s5676_s1 + $0x450] sm:$0xff] }
  0x20   :  { %1728 = vmatpush1.bf16.msra.mxu1 %v223_v49  ;;  %v232_v49 = vpack.c.bf16 %v45_v43, %v44_v42  ;;  %v284_v31 = vpack.c.bf16 %v149_v22, %v148_v21  ;;  %v54_v38 = vld [vmem:[%s5676_s1 + $0x150] sm:$0xff]  ;;  %v55_v39 = vld [vmem:[%s5676_s1 + $0x158] sm:$0xff]  ;;  %v152_v43 = vld [vmem:[%s5676_s1 + $0x460] sm:$0xff] }
  0x21   :  { %2235 = vmatpush1.bf16.msra.mxu0 %v4164_v50  ;;  %1729 = vmatprep.subr.bf16.mxu1 %v4008_v0  ;;  %v3707_v42 = vld [vmem:[%s5677_s0 + $0x138] ss:$52 sps:$4 sm:$0xff]   ;;  %v237_v46 = vpack.c.bf16 %v55_v39, %v54_v38  ;;  %v154_v53 = vld [vmem:[%s5676_s1 + $0x470] sm:$0xff]  ;;  %v3719_v21 = vld [vmem:[%s5677_s0 + $0x208] ss:$52 sps:$4 sm:$0xff]  }
  0x22   :  { %2236 = vmatprep.subr.bf16.mxu0 %v4008_v0  ;;  %v153_v45 = vld [vmem:[%s5676_s1 + $0x468] sm:$0xff]  ;;  %v155_v54 = vld [vmem:[%s5676_s1 + $0x478] sm:$0xff]  ;;  %v62_v16 = vld [vmem:[%s5676_s1 + $0x190] sm:$0xff] }
  0x23   :  { %v157_v1 = vld [vmem:[%s5676_s1 + $0x488] sm:$0xff]  ;;  %v160_v22 = vld [vmem:[%s5676_s1 + $0x4a0] sm:$0xff]  ;;  %v66_v39 = vld [vmem:[%s5676_s1 + $0x1b0] sm:$0xff] }
  0x24   :  { %1730 = vmatpush1.bf16.msra.mxu1 %v224_v55  ;;  %v142_v55 = vld [vmem:[%s5676_s1 + $0x410] sm:$0xff] }
  0x25   :  { %2237 = vmatpush1.bf16.msra.mxu0 %v4181_v56  ;;  %1731 = vmatprep.subr.bf16.mxu1 %v4008_v0  ;;  %v281_v60 = vpack.c.bf16 %v143_v57, %v142_v55  ;;  %v3711_v55 = vld [vmem:[%s5677_s0 + $0x1bc] ss:$52 sps:$4 sm:$0xff]  }
  0x26   :  { %2238 = vmatprep.subr.bf16.mxu0 %v4008_v0 }
  0x28   :  { %1732 = vmatpush1.bf16.msra.mxu1 %v225_v61  ;;  %v3695_v61 = vld [vmem:[%s5677_s0 + $0x68] ss:$52 sps:$4 sm:$0xff]  }
  0x29   :  { %2239 = vmatpush1.bf16.msra.mxu0 %v4201_v63  ;;  %1733 = vmatprep.subr.bf16.mxu1 %v4008_v0 }
  0x2a   :  { %2240 = vmatprep.subr.bf16.mxu0 %v4008_v0 }
  0x2c   :  { %1734 = vmatpush1.bf16.msra.mxu1 %v226_v4  ;;  %v49_v4 = vld [vmem:[%s5676_s1 + $0x128] sm:$0xff] }
  0x2d   :  { %2241 = vmatpush1.bf16.msra.mxu0 %v4221_v7  ;;  %1735 = vmatprep.subr.bf16.mxu1 %v4008_v0  ;;  %v234_v13 = vpack.c.bf16 %v49_v4, %v48_v3  ;;  %v60_v3 = vld [vmem:[%s5676_s1 + $0x180] sm:$0xff]  ;;  %v61_v4 = vld [vmem:[%s5676_s1 + $0x188] sm:$0xff] }
  0x2e   :  { %2242 = vmatprep.subr.bf16.mxu0 %v4008_v0  ;;  %v240_v15 = vpack.c.bf16 %v61_v4, %v60_v3  ;;  %v3732_v3 = vld [vmem:[%s5677_s0 + $0x2f0] ss:$52 sps:$4 sm:$0xff]  }
  0x2f   :  { %v3733_v4 = vld [vmem:[%s5677_s0 + $0x344] ss:$52 sps:$4 sm:$0xff]  }
  0x30   :  { %1736 = vmatpush1.bf16.msra.mxu1 %v227_v11  ;;  %v147_v11 = vld [vmem:[%s5676_s1 + $0x438] sm:$0xff] }
  0x31   :  { %2243 = vmatpush1.bf16.msra.mxu0 %v4235_v14  ;;  %1737 = vmatprep.subr.bf16.mxu1 %v4008_v0  ;;  %v283_v17 = vpack.c.bf16 %v147_v11, %v146_v9  ;;  %v159_v11 = vld [vmem:[%s5676_s1 + $0x498] sm:$0xff] }
  0x32   :  { %2244 = vmatprep.subr.bf16.mxu0 %v4008_v0 }
  0x34   :  { %1738 = vmatpush1.bf16.msra.mxu1 %v228_v19  ;;  %v3701_v19 = vld [vmem:[%s5677_s0 + $0xd0] ss:$52 sps:$4 sm:$0xff]  }
  0x35   :  { %2245 = vmatpush1.bf16.msra.mxu0 %v4249_v20  ;;  %1739 = vmatprep.subr.bf16.mxu1 %v4008_v0 }
  0x36   :  { %2246 = vmatprep.subr.bf16.mxu0 %v4008_v0 }
  0x38   :  { %1740 = vmatpush1.bf16.msra.mxu1 %v229_v26  ;;  %v52_v26 = vld [vmem:[%s5676_s1 + $0x140] sm:$0xff] }
  0x39   :  { %2247 = vmatpush1.bf16.msra.mxu0 %v4266_v27  ;;  %1741 = vmatprep.subr.bf16.mxu1 %v4008_v0  ;;  %v236_v37 = vpack.c.bf16 %v53_v28, %v52_v26  ;;  %v64_v26 = vld [vmem:[%s5676_s1 + $0x1a0] sm:$0xff]  ;;  %v65_v28 = vld [vmem:[%s5676_s1 + $0x1a8] sm:$0xff] }
  0x3a   :  { %2248 = vmatprep.subr.bf16.mxu0 %v4008_v0  ;;  %v242_v38 = vpack.c.bf16 %v65_v28, %v64_v26  ;;  %v3739_v26 = vld [vmem:[%s5677_s0 + $0x3ac] ss:$52 sps:$4 sm:$0xff]  }
  0x3b   :  { %v173_v28 = vld [vmem:[%s5676_s1 + $0x508] sm:$0xff] }
  0x3c   :  { %1742 = vmatpush1.bf16.msra.mxu1 %v230_v33  ;;  %v151_v33 = vld [vmem:[%s5676_s1 + $0x458] sm:$0xff] }
  0x3d   :  { %2249 = vmatpush1.bf16.msra.mxu0 %v4283_v34  ;;  %1743 = vmatprep.subr.bf16.mxu1 %v4008_v0 }
  0x3e   :  { %2250 = vmatprep.subr.bf16.mxu0 %v4008_v0 }
  0x40   :  { %1744 = vmatpush1.bf16.msra.mxu1 %v231_v40  ;;  %v285_v40 = vpack.c.bf16 %v151_v33, %v150_v32  ;;  %v162_v33 = vld [vmem:[%s5676_s1 + $0x4b0] sm:$0xff] }
  0x41   :  { %2251 = vmatpush1.bf16.msra.mxu0 %v4300_v41  ;;  %1882 = vmatprep.subr.bf16.mxu1 %v4008_v0 }
  0x42   :  { %2389 = vmatprep.subr.bf16.mxu0 %v4008_v0 }
  0x43   :  { %1746 = vmatmul.mubr.bf16.vlgmr.msra.gmra.mrb[0].mxu1 %v3685_v47  ;;  %v56_v47 = vld [vmem:[%s5676_s1 + $0x160] sm:$0xff] }
  0x44   :  { %2253 = vmatmul.mubr.bf16.vlgmr.msra.gmra.mrb[0].mxu0 %v3688_v48  ;;  %1883 = vmatpush1.bf16.msra.mxu1 %v232_v49  ;;  %v57_v48 = vld [vmem:[%s5676_s1 + $0x168] sm:$0xff]  ;;  %v3708_v49 = vld [vmem:[%s5677_s0 + $0x150] ss:$52 sps:$4 sm:$0xff]  }
  0x45   :  { %2390 = vmatpush1.bf16.msra.mxu0 %v280_v51  ;;  %1753 = vmatprep.mubr.bf16.mxu1 %v3691_v52  ;;  %v3709_v51 = vld [vmem:[%s5677_s0 + $0x1a4] ss:$52 sps:$4 sm:$0xff]   ;;  %v286_v52 = vpack.c.bf16 %v153_v45, %v152_v43  ;;  %v238_v57 = vpack.c.bf16 %v57_v48, %v56_v47 }
  0x46   :  { %2391 = vmatprep.subr.bf16.mxu0 %v4008_v0  ;;  %2260 = vmatprep.mubr.bf16.mxu0 %v3693_v58  ;;  %v58_v58 = vld [vmem:[%s5676_s1 + $0x170] sm:$0xff]  ;;  %v164_v45 = vld [vmem:[%s5676_s1 + $0x4c0] sm:$0xff] }
  0x47   :  { %1884 = vmatprep.subr.bf16.mxu1 %v4008_v0  ;;  %v3725_v43 = vld [vmem:[%s5677_s0 + $0x270] ss:$52 sps:$4 sm:$0xff]  }
  0x48   :  { %1885 = vmatpush1.bf16.msra.mxu1 %v233_v59  ;;  %v59_v59 = vld [vmem:[%s5676_s1 + $0x178] sm:$0xff]  ;;  %v68_v48 = vld [vmem:[%s5676_s1 + $0x1c0] sm:$0xff] }
  0x49   :  { %2392 = vmatpush1.bf16.msra.mxu0 %v281_v60  ;;  %1886 = vmatprep.subr.bf16.mxu1 %v4008_v0  ;;  %v287_v60 = vpack.c.bf16 %v155_v54, %v154_v53  ;;  %v239_v2 = vpack.c.bf16 %v59_v59, %v58_v58  ;;  %v166_v54 = vld [vmem:[%s5676_s1 + $0x4d0] sm:$0xff] }
  0x4a   :  { %2393 = vmatprep.subr.bf16.mxu0 %v4008_v0  ;;  %v70_v59 = vld [vmem:[%s5676_s1 + $0x1d0] sm:$0xff] }
  0x4b   :  { %1754 = vmatmul.mubr.bf16.gmra.mrb[4].mxu1 %v3695_v61  ;;  %v3713_v61 = vld [vmem:[%s5677_s0 + $0x1a0] ss:$52 sps:$4 sm:$0xff]  }
  0x4c   :  { %2261 = vmatmul.mubr.bf16.gmra.mrb[4].mxu0 %v3696_v62  ;;  %1761 = vmatprep.mubr.bf16.mxu1 %v3697_v5  ;;  %v156_v62 = vld [vmem:[%s5676_s1 + $0x480] sm:$0xff]  ;;  %v3714_v5 = vld [vmem:[%s5677_s0 + $0x1b8] ss:$52 sps:$4 sm:$0xff]  }
  0x4d   :  { %2394 = vmatpush1.bf16.msra.mxu0 %v282_v6  ;;  %2268 = vmatprep.mubr.bf16.mxu0 %v3699_v10  ;;  %v3715_v6 = vld [vmem:[%s5677_s0 + $0x20c] ss:$52 sps:$4 sm:$0xff]   ;;  %v288_v9 = vpack.c.bf16 %v157_v1, %v156_v62  ;;  %v158_v10 = vld [vmem:[%s5676_s1 + $0x490] sm:$0xff] }
  0x4e   :  { %2395 = vmatprep.subr.bf16.mxu0 %v4008_v0  ;;  %1887 = vmatpush1.bf16.msra.mxu1 %v234_v13  ;;  %v3717_v13 = vld [vmem:[%s5677_s0 + $0x224] ss:$52 sps:$4 sm:$0xff]  }
  0x4f   :  { %1888 = vmatprep.subr.bf16.mxu1 %v4008_v0  ;;  %v3731_v62 = vld [vmem:[%s5677_s0 + $0x2d8] ss:$52 sps:$4 sm:$0xff]   ;;  %v168_v1 = vld [vmem:[%s5676_s1 + $0x4e0] sm:$0xff] }
  0x51   :  { %2396 = vmatpush1.bf16.msra.mxu0 %v283_v17  ;;  %v63_v17 = vld [vmem:[%s5676_s1 + $0x198] sm:$0xff] }
  0x52   :  { %2397 = vmatprep.subr.bf16.mxu0 %v4008_v0  ;;  %1889 = vmatpush1.bf16.msra.mxu1 %v235_v23  ;;  %v161_v23 = vld [vmem:[%s5676_s1 + $0x4a8] sm:$0xff] }
  0x53   :  { %1762 = vmatmul.mubr.bf16.gmra.mrb[8].mxu1 %v3701_v19  ;;  %1890 = vmatprep.subr.bf16.mxu1 %v4008_v0  ;;  %v289_v19 = vpack.c.bf16 %v159_v11, %v158_v10  ;;  %v290_v32 = vpack.c.bf16 %v161_v23, %v160_v22  ;;  %v73_v10 = vld [vmem:[%s5676_s1 + $0x1e8] sm:$0xff]  ;;  %v170_v11 = vld [vmem:[%s5676_s1 + $0x4f0] sm:$0xff]  ;;  %v172_v23 = vld [vmem:[%s5676_s1 + $0x500] sm:$0xff] }
  0x54   :  { %2269 = vmatmul.mubr.bf16.gmra.mrb[8].mxu0 %v3702_v25  ;;  %1769 = vmatprep.mubr.bf16.mxu1 %v3703_v29  ;;  %v241_v25 = vpack.c.bf16 %v63_v17, %v62_v16  ;;  %v3720_v29 = vld [vmem:[%s5677_s0 + $0x220] ss:$52 sps:$4 sm:$0xff]  }
  0x55   :  { %2398 = vmatpush1.bf16.msra.mxu0 %v284_v31  ;;  %2276 = vmatprep.mubr.bf16.mxu0 %v3705_v35  ;;  %v3721_v31 = vld [vmem:[%s5677_s0 + $0x274] ss:$52 sps:$4 sm:$0xff]   ;;  %v163_v35 = vld [vmem:[%s5676_s1 + $0x4b8] sm:$0xff] }
  0x56   :  { %2399 = vmatprep.subr.bf16.mxu0 %v4008_v0  ;;  %1891 = vmatpush1.bf16.msra.mxu1 %v236_v37  ;;  %v3723_v37 = vld [vmem:[%s5677_s0 + $0x28c] ss:$52 sps:$4 sm:$0xff]   ;;  %v74_v16 = vld [vmem:[%s5676_s1 + $0x1f0] sm:$0xff] }
  0x57   :  { %1892 = vmatprep.subr.bf16.mxu1 %v4008_v0  ;;  %v3738_v22 = vld [vmem:[%s5677_s0 + $0x340] ss:$52 sps:$4 sm:$0xff]  }
  0x59   :  { %2400 = vmatpush1.bf16.msra.mxu0 %v285_v40  ;;  %v67_v40 = vld [vmem:[%s5676_s1 + $0x1b8] sm:$0xff] }
  0x5a   :  { %2401 = vmatprep.subr.bf16.mxu0 %v4008_v0  ;;  %1893 = vmatpush1.bf16.msra.mxu1 %v237_v46  ;;  %v165_v46 = vld [vmem:[%s5676_s1 + $0x4c8] sm:$0xff]  ;;  %v243_v47 = vpack.c.bf16 %v67_v40, %v66_v39 }
  0x5b   :  { %1770 = vmatmul.mubr.bf16.gmra.mrb[12].mxu1 %v3707_v42  ;;  %1894 = vmatprep.subr.bf16.mxu1 %v4008_v0  ;;  %v291_v42 = vpack.c.bf16 %v163_v35, %v162_v33  ;;  %v292_v53 = vpack.c.bf16 %v165_v46, %v164_v45  ;;  %v174_v33 = vld [vmem:[%s5676_s1 + $0x510] sm:$0xff]  ;;  %v175_v35 = vld [vmem:[%s5676_s1 + $0x518] sm:$0xff] }
  0x5c   :  { %2277 = vmatmul.mubr.bf16.gmra.mrb[12].mxu0 %v3708_v49  ;;  %1777 = vmatprep.mubr.bf16.mxu1 %v3709_v51  ;;  %v69_v49 = vld [vmem:[%s5676_s1 + $0x1c8] sm:$0xff]  ;;  %v178_v46 = vld [vmem:[%s5676_s1 + $0x530] sm:$0xff] }
  0x5d   :  { %2402 = vmatpush1.bf16.msra.mxu0 %v286_v52  ;;  %2284 = vmatprep.mubr.bf16.mxu0 %v3711_v55  ;;  %v3726_v51 = vld [vmem:[%s5677_s0 + $0x288] ss:$52 sps:$4 sm:$0xff]   ;;  %v244_v58 = vpack.c.bf16 %v69_v49, %v68_v48  ;;  %v3749_v49 = vld [vmem:[%s5677_s0 + $0x410] ss:$52 sps:$4 sm:$0xff]  }
  0x5e   :  { %2403 = vmatprep.subr.bf16.mxu0 %v4008_v0  ;;  %1895 = vmatpush1.bf16.msra.mxu1 %v238_v57  ;;  %v3727_v52 = vld [vmem:[%s5677_s0 + $0x2dc] ss:$52 sps:$4 sm:$0xff]   ;;  %v3729_v55 = vld [vmem:[%s5677_s0 + $0x2f4] ss:$52 sps:$4 sm:$0xff]  }
  0x5f   :  { %1896 = vmatprep.subr.bf16.mxu1 %v4008_v0  ;;  %v167_v57 = vld [vmem:[%s5676_s1 + $0x4d8] sm:$0xff]  ;;  %v3745_v40 = vld [vmem:[%s5677_s0 + $0x414] ss:$52 sps:$4 sm:$0xff]  }
  0x60   :  { %v3744_v39 = vld [vmem:[%s5677_s0 + $0x88] ss:$52 sps:$4 sm:$0xff]  }
  0x61   :  { %2404 = vmatpush1.bf16.msra.mxu0 %v287_v60  ;;  %v71_v60 = vld [vmem:[%s5676_s1 + $0x1d8] sm:$0xff]  ;;  %v3747_v45 = vld [vmem:[%s5677_s0 + $0xf4] ss:$52 sps:$4 sm:$0xff]  }
  0x62   :  { %2405 = vmatprep.subr.bf16.mxu0 %v4008_v0  ;;  %1897 = vmatpush1.bf16.msra.mxu1 %v239_v2  ;;  %v169_v2 = vld [vmem:[%s5676_s1 + $0x4e8] sm:$0xff] }
  0x63   :  { %1778 = vmatmul.mubr.bf16.gmra.mrb[16].mxu1 %v3713_v61  ;;  %1898 = vmatprep.subr.bf16.mxu1 %v4008_v0  ;;  %v293_v61 = vpack.c.bf16 %v167_v57, %v166_v54  ;;  %v3750_v54 = vld [vmem:[%s5677_s0 + $0xf0] ss:$52 sps:$4 sm:$0xff]  }
  0x64   :  { %2285 = vmatmul.mubr.bf16.gmra.mrb[16].mxu0 %v3714_v5  ;;  %1785 = vmatprep.mubr.bf16.mxu1 %v3715_v6  ;;  %v245_v5 = vpack.c.bf16 %v71_v60, %v70_v59  ;;  %v3737_v6 = vld [vmem:[%s5677_s0 + $0x24] ss:$52 sps:$4 sm:$0xff]   ;;  %v3753_v57 = vld [vmem:[%s5677_s0 + $0x15c] ss:$52 sps:$4 sm:$0xff]  }
  0x65   :  { %2406 = vmatpush1.bf16.msra.mxu0 %v288_v9  ;;  %2292 = vmatprep.mubr.bf16.mxu0 %v3717_v13  ;;  %v72_v9 = vld [vmem:[%s5676_s1 + $0x1e0] sm:$0xff]  ;;  %v171_v13 = vld [vmem:[%s5676_s1 + $0x4f8] sm:$0xff] }
  0x66   :  { %2407 = vmatprep.subr.bf16.mxu0 %v4008_v0  ;;  %1899 = vmatpush1.bf16.msra.mxu1 %v240_v15  ;;  %v294_v15 = vpack.c.bf16 %v169_v2, %v168_v1  ;;  %v246_v17 = vpack.c.bf16 %v73_v10, %v72_v9  ;;  %v183_v60 = vld [vmem:[%s5676_s1 + $0x558] sm:$0xff]  ;;  %v184_v1 = vld [vmem:[%s5676_s1 + $0x560] sm:$0xff] }
  0x67   :  { %1900 = vmatprep.subr.bf16.mxu1 %v4008_v0  ;;  %v3756_v2 = vld [vmem:[%s5677_s0 + $0x158] ss:$52 sps:$4 sm:$0xff]  }
  0x68   :  { %v187_v10 = vld [vmem:[%s5676_s1 + $0x578] sm:$0xff] }
  0x69   :  { %2408 = vmatpush1.bf16.msra.mxu0 %v289_v19  ;;  %v75_v19 = vld [vmem:[%s5676_s1 + $0x1f8] sm:$0xff] }
  0x6a   :  { %2409 = vmatprep.subr.bf16.mxu0 %v4008_v0  ;;  %1901 = vmatpush1.bf16.msra.mxu1 %v241_v25  ;;  %v3735_v25 = vld [vmem:[%s5677_s0 + $0x20] ss:$52 sps:$4 sm:$0xff]  }
  0x6b   :  { %1786 = vmatmul.mubr.bf16.gmra.mrb[20].mxu1 %v3719_v21  ;;  %1902 = vmatprep.subr.bf16.mxu1 %v4008_v0  ;;  %v295_v21 = vpack.c.bf16 %v171_v13, %v170_v11  ;;  %v3761_v11 = vld [vmem:[%s5677_s0 + $0x4e0] ss:$52 sps:$4 sm:$0xff]  }
  0x6c   :  { %2293 = vmatmul.mubr.bf16.gmra.mrb[20].mxu0 %v3720_v29  ;;  %1793 = vmatprep.mubr.bf16.mxu1 %v3721_v31  ;;  %v247_v29 = vpack.c.bf16 %v75_v19, %v74_v16  ;;  %v3741_v31 = vld [vmem:[%s5677_s0 + $0x8c] ss:$52 sps:$4 sm:$0xff]  }
  0x6d   :  { %2410 = vmatpush1.bf16.msra.mxu0 %v290_v32  ;;  %2300 = vmatprep.mubr.bf16.mxu0 %v3723_v37  ;;  %v296_v32 = vpack.c.bf16 %v173_v28, %v172_v23  ;;  %v3743_v37 = vld [vmem:[%s5677_s0 + $0x3a8] ss:$52 sps:$4 sm:$0xff]   ;;  %v3763_v19 = vld [vmem:[%s5677_s0 + $0x54c] ss:$52 sps:$4 sm:$0xff]  }
  0x6e   :  { %2411 = vmatprep.subr.bf16.mxu0 %v4008_v0  ;;  %1903 = vmatpush1.bf16.msra.mxu1 %v242_v38  ;;  %v297_v38 = vpack.c.bf16 %v175_v35, %v174_v33  ;;  %v189_v16 = vld [vmem:[%s5676_s1 + $0x588] sm:$0xff] }
  0x6f   :  { %1904 = vmatprep.subr.bf16.mxu1 %v4008_v0  ;;  %v3769_v33 = vld [vmem:[%s5677_s0 + $0x5b4] ss:$52 sps:$4 sm:$0xff]  }
  0x70   :  { %v3771_v35 = vld [vmem:[%s5677_s0 + $0x294] ss:$52 sps:$4 sm:$0xff]  }
  0x71   :  { %2412 = vmatpush1.bf16.msra.mxu0 %v291_v42  ;;  %v176_v42 = vld [vmem:[%s5676_s1 + $0x520] sm:$0xff] }
  0x72   :  { %2413 = vmatprep.subr.bf16.mxu0 %v4008_v0  ;;  %1905 = vmatpush1.bf16.msra.mxu1 %v243_v47  ;;  %v179_v47 = vld [vmem:[%s5676_s1 + $0x538] sm:$0xff] }
  0x73   :  { %1794 = vmatmul.mubr.bf16.gmra.mrb[24].mxu1 %v3725_v43  ;;  %1906 = vmatprep.subr.bf16.mxu1 %v4008_v0  ;;  %v177_v43 = vld [vmem:[%s5676_s1 + $0x528] sm:$0xff] }
  0x74   :  { %2301 = vmatmul.mubr.bf16.gmra.mrb[24].mxu0 %v3726_v51  ;;  %1801 = vmatprep.mubr.bf16.mxu1 %v3727_v52  ;;  %v298_v48 = vpack.c.bf16 %v177_v43, %v176_v42  ;;  %v299_v51 = vpack.c.bf16 %v179_v47, %v178_v46  ;;  %v180_v52 = vld [vmem:[%s5676_s1 + $0x540] sm:$0xff]  ;;  %v3775_v46 = vld [vmem:[%s5677_s0 + $0x61c] ss:$52 sps:$4 sm:$0xff]   ;;  %v197_v47 = vld [vmem:[%s5676_s1 + $0x5c8] sm:$0xff] }
  0x75   :  { %2414 = vmatpush1.bf16.msra.mxu0 %v292_v53  ;;  %2308 = vmatprep.mubr.bf16.mxu0 %v3729_v55  ;;  %v181_v53 = vld [vmem:[%s5676_s1 + $0x548] sm:$0xff]  ;;  %v3751_v55 = vld [vmem:[%s5677_s0 + $0x47c] ss:$52 sps:$4 sm:$0xff]   ;;  %v196_v43 = vld [vmem:[%s5676_s1 + $0x5c0] sm:$0xff] }
  0x76   :  { %2415 = vmatprep.subr.bf16.mxu0 %v4008_v0  ;;  %1907 = vmatpush1.bf16.msra.mxu1 %v244_v58  ;;  %v182_v58 = vld [vmem:[%s5676_s1 + $0x550] sm:$0xff]  ;;  %v300_v59 = vpack.c.bf16 %v181_v53, %v180_v52  ;;  %v199_v52 = vld [vmem:[%s5676_s1 + $0x5d8] sm:$0xff]  ;;  %v200_v53 = vld [vmem:[%s5676_s1 + $0x5e0] sm:$0xff] }
  0x77   :  { %1908 = vmatprep.subr.bf16.mxu1 %v4008_v0 }
  0x79   :  { %2416 = vmatpush1.bf16.msra.mxu0 %v293_v61  ;;  %v3755_v61 = vld [vmem:[%s5677_s0 + $0x478] ss:$52 sps:$4 sm:$0xff]  }
  0x7a   :  { %2417 = vmatprep.subr.bf16.mxu0 %v4008_v0  ;;  %1909 = vmatpush1.bf16.msra.mxu1 %v245_v5  ;;  %v3759_v5 = vld [vmem:[%s5677_s0 + $0x1c4] ss:$52 sps:$4 sm:$0xff]  }
  0x7b   :  { %1802 = vmatmul.mubr.bf16.gmra.mrb[28].mxu1 %v3731_v62  ;;  %1910 = vmatprep.subr.bf16.mxu1 %v4008_v0  ;;  %v301_v62 = vpack.c.bf16 %v183_v60, %v182_v58  ;;  %v3780_v58 = vld [vmem:[%s5677_s0 + $0x2f8] ss:$52 sps:$4 sm:$0xff]  }
  0x7c   :  { %2309 = vmatmul.mubr.bf16.gmra.mrb[28].mxu0 %v3732_v3  ;;  %1809 = vmatprep.mubr.bf16.mxu1 %v3733_v4  ;;  %v3757_v3 = vld [vmem:[%s5677_s0 + $0x4e4] ss:$52 sps:$4 sm:$0xff]   ;;  %v185_v4 = vld [vmem:[%s5676_s1 + $0x568] sm:$0xff] }
  0x7d   :  { %2418 = vmatpush1.bf16.msra.mxu0 %v294_v15  ;;  %2421 = vmatprep.mubr.bf16.mxu0 %v3737_v6  ;;  %v186_v6 = vld [vmem:[%s5676_s1 + $0x570] sm:$0xff]  ;;  %v302_v9 = vpack.c.bf16 %v185_v4, %v184_v1  ;;  %v188_v15 = vld [vmem:[%s5676_s1 + $0x580] sm:$0xff]  ;;  %v203_v1 = vld [vmem:[%s5676_s1 + $0x5f8] sm:$0xff] }
  0x7e   :  { %2419 = vmatprep.subr.bf16.mxu0 %v4008_v0  ;;  %1911 = vmatpush1.bf16.msra.mxu1 %v246_v17  ;;  %v303_v13 = vpack.c.bf16 %v187_v10, %v186_v6  ;;  %v3762_v17 = vld [vmem:[%s5677_s0 + $0x1c0] ss:$52 sps:$4 sm:$0xff]   ;;  %v304_v23 = vpack.c.bf16 %v189_v16, %v188_v15  ;;  %v3783_v60 = vld [vmem:[%s5677_s0 + $0x364] ss:$52 sps:$4 sm:$0xff]   ;;  %v3792_v15 = vld [vmem:[%s5677_s0 + $0x3c8] ss:$52 sps:$4 sm:$0xff]  }
  0x7f   :  { %1912 = vmatprep.subr.bf16.mxu1 %v4008_v0  ;;  %v3786_v4 = vld [vmem:[%s5677_s0 + $0x360] ss:$52 sps:$4 sm:$0xff]  }
  0x80   :  { %v3790_v6 = vld [vmem:[%s5677_s0 + $0x3cc] ss:$52 sps:$4 sm:$0xff]  }
  0x81   :  { %2420 = vmatpush1.bf16.msra.mxu0 %v295_v21  ;;  %v3765_v21 = vld [vmem:[%s5677_s0 + $0x22c] ss:$52 sps:$4 sm:$0xff]  }
  0x82   :  { %2558 = vmatprep.subr.bf16.mxu0 %v4008_v0  ;;  %1913 = vmatpush1.bf16.msra.mxu1 %v247_v29  ;;  %v192_v29 = vld [vmem:[%s5676_s1 + $0x5a0] sm:$0xff] }
  0x83   :  { %1810 = vmatmul.mubr.bf16.gmra.mrb[32].mxu1 %v3738_v22  ;;  %2051 = vmatprep.subr.bf16.mxu1 %v4008_v0  ;;  %v190_v22 = vld [vmem:[%s5676_s1 + $0x590] sm:$0xff]  ;;  %v76_v10 = vld [vmem:[%s5676_s1 + $0x200] sm:$0xff] }
  0x84   :  { %2422 = vmatmul.mubr.bf16.vlgmr.msra.gmra.mrb[0].mxu0 %v3735_v25  ;;  %1817 = vmatprep.mubr.bf16.mxu1 %v3739_v26  ;;  %v191_v25 = vld [vmem:[%s5676_s1 + $0x598] sm:$0xff] }
  0x85   :  { %2429 = vmatprep.mubr.bf16.mxu0 %v3741_v31  ;;  %2559 = vmatpush1.bf16.msra.mxu0 %v296_v32  ;;  %v3767_v26 = vld [vmem:[%s5677_s0 + $0x548] ss:$52 sps:$4 sm:$0xff]   ;;  %v305_v28 = vpack.c.bf16 %v191_v25, %v190_v22  ;;  %v80_v25 = vld [vmem:[%s5676_s1 + $0x220] sm:$0xff] }
  0x86   :  { %2560 = vmatprep.subr.bf16.mxu0 %v4008_v0  ;;  %v193_v31 = vld [vmem:[%s5676_s1 + $0x5a8] sm:$0xff]  ;;  %v79_v22 = vld [vmem:[%s5676_s1 + $0x218] sm:$0xff] }
  0x87   :  { %v3768_v32 = vld [vmem:[%s5677_s0 + $0x228] ss:$52 sps:$4 sm:$0xff]  }
  0x89   :  { %2561 = vmatpush1.bf16.msra.mxu0 %v297_v38  ;;  %v306_v38 = vpack.c.bf16 %v193_v31, %v192_v29  ;;  %v3798_v29 = vld [vmem:[%s5677_s0 + $0x430] ss:$52 sps:$4 sm:$0xff]  }
  0x8a   :  { %2562 = vmatprep.subr.bf16.mxu0 %v4008_v0  ;;  %v3799_v31 = vld [vmem:[%s5677_s0 + $0xdc] ss:$52 sps:$4 sm:$0xff]  }
  0x8b   :  { %1818 = vmatmul.mubr.bf16.gmra.mrb[36].mxu1 %v3743_v37  ;;  %v194_v37 = vld [vmem:[%s5676_s1 + $0x5b0] sm:$0xff] }
  0x8c   :  { %2430 = vmatmul.mubr.bf16.gmra.mrb[4].mxu0 %v3744_v39  ;;  %1825 = vmatprep.mubr.bf16.mxu1 %v3745_v40  ;;  %v195_v39 = vld [vmem:[%s5676_s1 + $0x5b8] sm:$0xff]  ;;  %v3773_v40 = vld [vmem:[%s5677_s0 + $0x5b0] ss:$52 sps:$4 sm:$0xff]  }
  0x8d   :  { %2437 = vmatprep.mubr.bf16.mxu0 %v3747_v45  ;;  %2563 = vmatpush1.bf16.msra.mxu0 %v298_v48  ;;  %v307_v42 = vpack.c.bf16 %v195_v39, %v194_v37  ;;  %v3774_v45 = vld [vmem:[%s5677_s0 + $0x290] ss:$52 sps:$4 sm:$0xff]   ;;  %v83_v37 = vld [vmem:[%s5676_s1 + $0x238] sm:$0xff] }
  0x8e   :  { %2564 = vmatprep.subr.bf16.mxu0 %v4008_v0  ;;  %v3777_v48 = vld [vmem:[%s5677_s0 + $0x2fc] ss:$52 sps:$4 sm:$0xff]   ;;  %v84_v39 = vld [vmem:[%s5676_s1 + $0x240] sm:$0xff] }
  0x91   :  { %2565 = vmatpush1.bf16.msra.mxu0 %v299_v51  ;;  %v308_v51 = vpack.c.bf16 %v197_v47, %v196_v43  ;;  %v3804_v43 = vld [vmem:[%s5677_s0 + $0x498] ss:$52 sps:$4 sm:$0xff]  }
  0x92   :  { %2566 = vmatprep.subr.bf16.mxu0 %v4008_v0 }
  0x93   :  { %1826 = vmatmul.mubr.bf16.gmra.mrb[40].mxu1 %v3749_v49  ;;  %v198_v49 = vld [vmem:[%s5676_s1 + $0x5d0] sm:$0xff] }
  0x94   :  { %2438 = vmatmul.mubr.bf16.gmra.mrb[8].mxu0 %v3750_v54  ;;  %1833 = vmatprep.mubr.bf16.mxu1 %v3751_v55  ;;  %v3779_v54 = vld [vmem:[%s5677_s0 + $0x618] ss:$52 sps:$4 sm:$0xff]   ;;  %v309_v55 = vpack.c.bf16 %v199_v52, %v198_v49  ;;  %v88_v52 = vld [vmem:[%s5676_s1 + $0x260] sm:$0xff] }
  0x95   :  { %2445 = vmatprep.mubr.bf16.mxu0 %v3753_v57  ;;  %2567 = vmatpush1.bf16.msra.mxu0 %v300_v59  ;;  %v201_v57 = vld [vmem:[%s5676_s1 + $0x5e8] sm:$0xff]  ;;  %v3781_v59 = vld [vmem:[%s5677_s0 + $0x684] ss:$52 sps:$4 sm:$0xff]  }
  0x96   :  { %2568 = vmatprep.subr.bf16.mxu0 %v4008_v0  ;;  %v87_v49 = vld [vmem:[%s5676_s1 + $0x258] sm:$0xff] }
  0x99   :  { %2569 = vmatpush1.bf16.msra.mxu0 %v301_v62  ;;  %v202_v62 = vld [vmem:[%s5676_s1 + $0x5f0] sm:$0xff] }
  0x9a   :  { %2570 = vmatprep.subr.bf16.mxu0 %v4008_v0 }
  0x9b   :  { %1834 = vmatmul.mubr.bf16.gmra.mrb[44].mxu1 %v3755_v61  ;;  %v310_v61 = vpack.c.bf16 %v201_v57, %v200_v53  ;;  %v89_v53 = vld [vmem:[%s5676_s1 + $0x268] sm:$0xff] }
  0x9c   :  { %2446 = vmatmul.mubr.bf16.gmra.mrb[12].mxu0 %v3756_v2  ;;  %1841 = vmatprep.mubr.bf16.mxu1 %v3757_v3  ;;  %v311_v2 = vpack.c.bf16 %v203_v1, %v202_v62  ;;  %v3785_v3 = vld [vmem:[%s5677_s0 + $0x680] ss:$52 sps:$4 sm:$0xff]  }
  0x9d   :  { %2453 = vmatprep.mubr.bf16.mxu0 %v3759_v5  ;;  %2571 = vmatpush1.bf16.msra.mxu0 %v302_v9  ;;  %v3789_v5 = vld [vmem:[%s5677_s0 + $0xc] ss:$52 sps:$4 sm:$0xff]   ;;  %v4009_v9 = vmov 0.0  }
  0x9e   :  { %2572 = vmatprep.subr.bf16.mxu0 %v4008_v0  ;;  %v3811_v57 = vld [vmem:[%s5677_s0 + $0x1ac] ss:$52 sps:$4 sm:$0xff]  }
  0x9f   :  { %v92_v1 = vld [vmem:[%s5676_s1 + $0x280] sm:$0xff] }
  0xa1   :  { %2573 = vmatpush1.bf16.msra.mxu0 %v303_v13  ;;  %v3787_v13 = vld [vmem:[%s5677_s0 + $0x8] ss:$52 sps:$4 sm:$0xff]  }
  0xa2   :  { %2574 = vmatprep.subr.bf16.mxu0 %v4008_v0 }
  0xa3   :  { %1842 = vmatmul.mubr.bf16.gmra.mrb[48].mxu1 %v3761_v11  ;;  %v77_v11 = vld [vmem:[%s5676_s1 + $0x208] sm:$0xff] }
  0xa4   :  { %2454 = vmatmul.mubr.bf16.gmra.mrb[16].mxu0 %v3762_v17  ;;  %1849 = vmatprep.mubr.bf16.mxu1 %v3763_v19  ;;  %v248_v16 = vpack.c.bf16 %v77_v11, %v76_v10  ;;  %v3793_v17 = vld [vmem:[%s5677_s0 + $0x74] ss:$52 sps:$4 sm:$0xff]  }
  0xa5   :  { %2461 = vmatprep.mubr.bf16.mxu0 %v3765_v21  ;;  %2575 = vmatpush1.bf16.msra.mxu0 %v304_v23  ;;  %v3795_v19 = vld [vmem:[%s5677_s0 + $0x434] ss:$52 sps:$4 sm:$0xff]  }
  0xa6   :  { %2576 = vmatprep.subr.bf16.mxu0 %v4008_v0  ;;  %v78_v21 = vld [vmem:[%s5676_s1 + $0x210] sm:$0xff] }
  0xa7   :  { %v249_v23 = vpack.c.bf16 %v79_v22, %v78_v21  ;;  %v94_v11 = vld [vmem:[%s5676_s1 + $0x290] sm:$0xff] }
  0xa8   :  { %v3822_v21 = vld [vmem:[%s5677_s0 + $0x5d0] ss:$52 sps:$4 sm:$0xff]  }
  0xa9   :  { %2577 = vmatpush1.bf16.msra.mxu0 %v305_v28  ;;  %v3797_v28 = vld [vmem:[%s5677_s0 + $0x70] ss:$52 sps:$4 sm:$0xff]  }
  0xaa   :  { %2578 = vmatprep.subr.bf16.mxu0 %v4008_v0  ;;  %v3823_v22 = vld [vmem:[%s5677_s0 + $0x27c] ss:$52 sps:$4 sm:$0xff]  }
  0xab   :  { %1850 = vmatmul.mubr.bf16.gmra.mrb[52].mxu1 %v3767_v26  ;;  %v81_v26 = vld [vmem:[%s5676_s1 + $0x228] sm:$0xff] }
  0xac   :  { %2462 = vmatmul.mubr.bf16.gmra.mrb[20].mxu0 %v3768_v32  ;;  %1857 = vmatprep.mubr.bf16.mxu1 %v3769_v33  ;;  %v3801_v32 = vld [vmem:[%s5677_s0 + $0x49c] ss:$52 sps:$4 sm:$0xff]   ;;  %v250_v33 = vpack.c.bf16 %v81_v26, %v80_v25 }
  0xad   :  { %2469 = vmatprep.mubr.bf16.mxu0 %v3771_v35  ;;  %2579 = vmatpush1.bf16.msra.mxu0 %v306_v38  ;;  %v82_v35 = vld [vmem:[%s5676_s1 + $0x230] sm:$0xff] }
  0xae   :  { %2580 = vmatprep.subr.bf16.mxu0 %v4008_v0  ;;  %v251_v38 = vpack.c.bf16 %v83_v37, %v82_v35  ;;  %v98_v26 = vld [vmem:[%s5676_s1 + $0x2b0] sm:$0xff]  ;;  %v3828_v35 = vld [vmem:[%s5677_s0 + $0x638] ss:$52 sps:$4 sm:$0xff]  }
  0xaf   :  { %v3829_v37 = vld [vmem:[%s5677_s0 + $0x2e4] ss:$52 sps:$4 sm:$0xff]  }
  0xb1   :  { %2581 = vmatpush1.bf16.msra.mxu0 %v307_v42  ;;  %v3803_v42 = vld [vmem:[%s5677_s0 + $0xd8] ss:$52 sps:$4 sm:$0xff]  }
  0xb2   :  { %2582 = vmatprep.subr.bf16.mxu0 %v4008_v0 }
  0xb3   :  { %1858 = vmatmul.mubr.bf16.gmra.mrb[56].mxu1 %v3773_v40  ;;  %v85_v40 = vld [vmem:[%s5676_s1 + $0x248] sm:$0xff] }
  0xb4   :  { %2470 = vmatmul.mubr.bf16.gmra.mrb[24].mxu0 %v3774_v45  ;;  %1865 = vmatprep.mubr.bf16.mxu1 %v3775_v46  ;;  %v3805_v45 = vld [vmem:[%s5677_s0 + $0x144] ss:$52 sps:$4 sm:$0xff]   ;;  %v252_v47 = vpack.c.bf16 %v85_v40, %v84_v39  ;;  %v102_v40 = vld [vmem:[%s5676_s1 + $0x2d0] sm:$0xff] }
  0xb5   :  { %2477 = vmatprep.mubr.bf16.mxu0 %v3777_v48  ;;  %2583 = vmatpush1.bf16.msra.mxu0 %v308_v51  ;;  %v3807_v46 = vld [vmem:[%s5677_s0 + $0x504] ss:$52 sps:$4 sm:$0xff]   ;;  %v86_v48 = vld [vmem:[%s5676_s1 + $0x250] sm:$0xff] }
  0xb6   :  { %2584 = vmatprep.subr.bf16.mxu0 %v4008_v0  ;;  %v253_v51 = vpack.c.bf16 %v87_v49, %v86_v48  ;;  %v3834_v48 = vld [vmem:[%s5677_s0 + $0x6a0] ss:$52 sps:$4 sm:$0xff]  }
  0xb7   :  { %v3835_v49 = vld [vmem:[%s5677_s0 + $0x34c] ss:$52 sps:$4 sm:$0xff]  }
  0xb9   :  { %2585 = vmatpush1.bf16.msra.mxu0 %v309_v55  ;;  %v3810_v55 = vld [vmem:[%s5677_s0 + $0x500] ss:$52 sps:$4 sm:$0xff]  }
  0xba   :  { %2586 = vmatprep.subr.bf16.mxu0 %v4008_v0 }
  0xbb   :  { %1866 = vmatmul.mubr.bf16.gmra.mrb[60].mxu1 %v3779_v54  ;;  %v3809_v54 = vld [vmem:[%s5677_s0 + $0x140] ss:$52 sps:$4 sm:$0xff]  }
  0xbc   :  { %2478 = vmatmul.mubr.bf16.gmra.mrb[28].mxu0 %v3780_v58  ;;  %1873 = vmatprep.mubr.bf16.mxu1 %v3781_v59  ;;  %v3813_v58 = vld [vmem:[%s5677_s0 + $0x56c] ss:$52 sps:$4 sm:$0xff]   ;;  %v254_v59 = vpack.c.bf16 %v89_v53, %v88_v52  ;;  %v106_v53 = vld [vmem:[%s5676_s1 + $0x2f0] sm:$0xff] }
  0xbd   :  { %2485 = vmatprep.mubr.bf16.mxu0 %v3783_v60  ;;  %2587 = vmatpush1.bf16.msra.mxu0 %v310_v61  ;;  %v90_v60 = vld [vmem:[%s5676_s1 + $0x270] sm:$0xff]  ;;  %v91_v61 = vld [vmem:[%s5676_s1 + $0x278] sm:$0xff] }
  0xbe   :  { %2588 = vmatprep.subr.bf16.mxu0 %v4008_v0  ;;  %v255_v62 = vpack.c.bf16 %v91_v61, %v90_v60  ;;  %v3837_v60 = vld [vmem:[%s5677_s0 + $0x28] ss:$52 sps:$4 sm:$0xff]  }
  0xbf   :  { %v3841_v61 = vld [vmem:[%s5677_s0 + $0x3b4] ss:$52 sps:$4 sm:$0xff]  }
  0xc1   :  { %2589 = vmatpush1.bf16.msra.mxu0 %v311_v2  ;;  %v93_v2 = vld [vmem:[%s5676_s1 + $0x288] sm:$0xff] }
  0xc2   :  { %3196 = vmatprep.subr.bf16.mxu0 %v4009_v9  ;;  %v256_v10 = vpack.c.bf16 %v93_v2, %v92_v1  ;;  %v206_v2 = vld [vmem:[%s5676_s1 + $0x610] sm:$0xff] }
  0xc3   :  { %1874 = vmatmul.mubr.bf16.gmra.mrb[64].mxu1 %v3785_v3  ;;  %v3815_v3 = vld [vmem:[%s5677_s0 + $0x1a8] ss:$52 sps:$4 sm:$0xff]  }
  0xc4   :  { %2486 = vmatmul.mubr.bf16.gmra.mrb[32].mxu0 %v3786_v4  ;;  %1914 = vmatprep.mubr.bf16.mxu1 %v3789_v5  ;;  %v3816_v4 = vld [vmem:[%s5677_s0 + $0x568] ss:$52 sps:$4 sm:$0xff]  }
  0xc5   :  { %2493 = vmatprep.mubr.bf16.mxu0 %v3790_v6  ;;  %v3817_v5 = vld [vmem:[%s5677_s0 + $0x214] ss:$52 sps:$4 sm:$0xff]  }
  0xc6   :  { %v3819_v6 = vld [vmem:[%s5677_s0 + $0x5d4] ss:$52 sps:$4 sm:$0xff]  }
  0xcb   :  { %1915 = vmatmul.mubr.bf16.vlgmr.msra.gmra.mrb[0].mxu1 %v3787_v13  ;;  %v95_v13 = vld [vmem:[%s5676_s1 + $0x298] sm:$0xff] }
  0xcc   :  { %2494 = vmatmul.mubr.bf16.gmra.mrb[36].mxu0 %v3792_v15  ;;  %2052 = vmatpush1.bf16.msra.mxu1 %v248_v16  ;;  %v257_v15 = vpack.c.bf16 %v95_v13, %v94_v11  ;;  %v96_v16 = vld [vmem:[%s5676_s1 + $0x2a0] sm:$0xff]  ;;  %v3847_v13 = vld [vmem:[%s5677_s0 + $0x41c] ss:$52 sps:$4 sm:$0xff]  }
  0xcd   :  { %1922 = vmatprep.mubr.bf16.mxu1 %v3793_v17  ;;  %2501 = vmatprep.mubr.bf16.mxu0 %v3795_v19  ;;  %v97_v17 = vld [vmem:[%s5676_s1 + $0x2a8] sm:$0xff]  ;;  %v3821_v19 = vld [vmem:[%s5677_s0 + $0x210] ss:$52 sps:$4 sm:$0xff]  }
  0xce   :  { %2053 = vmatprep.subr.bf16.mxu1 %v4008_v0  ;;  %v258_v25 = vpack.c.bf16 %v97_v17, %v96_v16  ;;  %v3846_v11 = vld [vmem:[%s5677_s0 + $0x90] ss:$52 sps:$4 sm:$0xff]  }
  0xcf   :  { %v210_v17 = vld [vmem:[%s5676_s1 + $0x630] sm:$0xff] }
  0xd0   :  { %2054 = vmatpush1.bf16.msra.mxu1 %v249_v23  ;;  %v3825_v23 = vld [vmem:[%s5677_s0 + $0x63c] ss:$52 sps:$4 sm:$0xff]  }
  0xd1   :  { %2055 = vmatprep.subr.bf16.mxu1 %v4008_v0 }
  0xd3   :  { %1923 = vmatmul.mubr.bf16.gmra.mrb[4].mxu1 %v3797_v28  ;;  %v99_v28 = vld [vmem:[%s5676_s1 + $0x2b8] sm:$0xff] }
  0xd4   :  { %2502 = vmatmul.mubr.bf16.gmra.mrb[40].mxu0 %v3798_v29  ;;  %1930 = vmatprep.mubr.bf16.mxu1 %v3799_v31  ;;  %v259_v29 = vpack.c.bf16 %v99_v28, %v98_v26  ;;  %v100_v31 = vld [vmem:[%s5676_s1 + $0x2c0] sm:$0xff]  ;;  %v3852_v26 = vld [vmem:[%s5677_s0 + $0xf8] ss:$52 sps:$4 sm:$0xff]  }
  0xd5   :  { %2509 = vmatprep.mubr.bf16.mxu0 %v3801_v32  ;;  %2056 = vmatpush1.bf16.msra.mxu1 %v250_v33  ;;  %v101_v32 = vld [vmem:[%s5676_s1 + $0x2c8] sm:$0xff]  ;;  %v3853_v28 = vld [vmem:[%s5677_s0 + $0x484] ss:$52 sps:$4 sm:$0xff]  }
  0xd6   :  { %2057 = vmatprep.subr.bf16.mxu1 %v4008_v0  ;;  %v3827_v33 = vld [vmem:[%s5677_s0 + $0x278] ss:$52 sps:$4 sm:$0xff]   ;;  %v260_v39 = vpack.c.bf16 %v101_v32, %v100_v31  ;;  %v214_v32 = vld [vmem:[%s5676_s1 + $0x650] sm:$0xff] }
  0xd9   :  { %2058 = vmatpush1.bf16.msra.mxu1 %v251_v38  ;;  %v3831_v38 = vld [vmem:[%s5677_s0 + $0x6a4] ss:$52 sps:$4 sm:$0xff]  }
  0xda   :  { %2059 = vmatprep.subr.bf16.mxu1 %v4008_v0 }
  0xdb   :  { %1931 = vmatmul.mubr.bf16.gmra.mrb[8].mxu1 %v3803_v42  ;;  %v103_v42 = vld [vmem:[%s5676_s1 + $0x2d8] sm:$0xff] }
  0xdc   :  { %2510 = vmatmul.mubr.bf16.gmra.mrb[44].mxu0 %v3804_v43  ;;  %1938 = vmatprep.mubr.bf16.mxu1 %v3805_v45  ;;  %v261_v43 = vpack.c.bf16 %v103_v42, %v102_v40  ;;  %v104_v45 = vld [vmem:[%s5676_s1 + $0x2e0] sm:$0xff]  ;;  %v3863_v42 = vld [vmem:[%s5677_s0 + $0x4e8] ss:$52 sps:$4 sm:$0xff]  }
  0xdd   :  { %2517 = vmatprep.mubr.bf16.mxu0 %v3807_v46  ;;  %2060 = vmatpush1.bf16.msra.mxu1 %v252_v47  ;;  %v105_v46 = vld [vmem:[%s5676_s1 + $0x2e8] sm:$0xff]  ;;  %v3833_v47 = vld [vmem:[%s5677_s0 + $0x2e0] ss:$52 sps:$4 sm:$0xff]  }
  0xde   :  { %2061 = vmatprep.subr.bf16.mxu1 %v4008_v0  ;;  %v262_v52 = vpack.c.bf16 %v105_v46, %v104_v45  ;;  %v3861_v40 = vld [vmem:[%s5677_s0 + $0x1cc] ss:$52 sps:$4 sm:$0xff]   ;;  %v3865_v45 = vld [vmem:[%s5677_s0 + $0x554] ss:$52 sps:$4 sm:$0xff]  }
  0xdf   :  { %v3867_v46 = vld [vmem:[%s5677_s0 + $0x234] ss:$52 sps:$4 sm:$0xff]  }
  0xe1   :  { %2062 = vmatpush1.bf16.msra.mxu1 %v253_v51  ;;  %v3839_v51 = vld [vmem:[%s5677_s0 + $0x2c] ss:$52 sps:$4 sm:$0xff]  }
  0xe2   :  { %2063 = vmatprep.subr.bf16.mxu1 %v4008_v0 }
  0xe3   :  { %1939 = vmatmul.mubr.bf16.gmra.mrb[12].mxu1 %v3809_v54  ;;  %v107_v54 = vld [vmem:[%s5676_s1 + $0x2f8] sm:$0xff] }
  0xe4   :  { %2518 = vmatmul.mubr.bf16.gmra.mrb[48].mxu0 %v3810_v55  ;;  %1946 = vmatprep.mubr.bf16.mxu1 %v3811_v57  ;;  %v263_v55 = vpack.c.bf16 %v107_v54, %v106_v53  ;;  %v204_v57 = vld [vmem:[%s5676_s1 + $0x600] sm:$0xff]  ;;  %v3876_v53 = vld [vmem:[%s5677_s0 + $0x298] ss:$52 sps:$4 sm:$0xff]  }
  0xe5   :  { %2525 = vmatprep.mubr.bf16.mxu0 %v3813_v58  ;;  %2064 = vmatpush1.bf16.msra.mxu1 %v254_v59  ;;  %v205_v58 = vld [vmem:[%s5676_s1 + $0x608] sm:$0xff]  ;;  %v3877_v54 = vld [vmem:[%s5677_s0 + $0x624] ss:$52 sps:$4 sm:$0xff]  }
  0xe6   :  { %2065 = vmatprep.subr.bf16.mxu1 %v4008_v0  ;;  %v3840_v59 = vld [vmem:[%s5677_s0 + $0x348] ss:$52 sps:$4 sm:$0xff]   ;;  %v312_v1 = vpack.c.bf16 %v205_v58, %v204_v57  ;;  %v3881_v57 = vld [vmem:[%s5677_s0 + $0x620] ss:$52 sps:$4 sm:$0xff]  }
  0xe7   :  { %v3882_v58 = vld [vmem:[%s5677_s0 + $0x300] ss:$52 sps:$4 sm:$0xff]  }
  0xe9   :  { %2066 = vmatpush1.bf16.msra.mxu1 %v255_v62  ;;  %v3843_v62 = vld [vmem:[%s5677_s0 + $0x94] ss:$52 sps:$4 sm:$0xff]  }
  0xea   :  { %2067 = vmatprep.subr.bf16.mxu1 %v4008_v0 }
  0xeb   :  { %1947 = vmatmul.mubr.bf16.gmra.mrb[16].mxu1 %v3815_v3  ;;  %v207_v3 = vld [vmem:[%s5676_s1 + $0x618] sm:$0xff] }
  0xec   :  { %2526 = vmatmul.mubr.bf16.gmra.mrb[52].mxu0 %v3816_v4  ;;  %1954 = vmatprep.mubr.bf16.mxu1 %v3817_v5  ;;  %v313_v4 = vpack.c.bf16 %v207_v3, %v206_v2  ;;  %v208_v5 = vld [vmem:[%s5676_s1 + $0x620] sm:$0xff]  ;;  %v3892_v2 = vld [vmem:[%s5677_s0 + $0x3d4] ss:$52 sps:$4 sm:$0xff]  }
  0xed   :  { %2533 = vmatprep.mubr.bf16.mxu0 %v3819_v6  ;;  %2068 = vmatpush1.bf16.msra.mxu1 %v256_v10  ;;  %v209_v6 = vld [vmem:[%s5676_s1 + $0x628] sm:$0xff]  ;;  %v3845_v10 = vld [vmem:[%s5677_s0 + $0x3b0] ss:$52 sps:$4 sm:$0xff]  }
  0xee   :  { %2069 = vmatprep.subr.bf16.mxu1 %v4008_v0  ;;  %v314_v16 = vpack.c.bf16 %v209_v6, %v208_v5  ;;  %v3889_v3 = vld [vmem:[%s5677_s0 + $0x10] ss:$52 sps:$4 sm:$0xff]  }
  0xef   :  { %v3895_v5 = vld [vmem:[%s5677_s0 + $0x7c] ss:$52 sps:$4 sm:$0xff]  }
  0xf0   :  { %v3897_v6 = vld [vmem:[%s5677_s0 + $0x43c] ss:$52 sps:$4 sm:$0xff]  }
  0xf1   :  { %2070 = vmatpush1.bf16.msra.mxu1 %v257_v15  ;;  %v3849_v15 = vld [vmem:[%s5677_s0 + $0xfc] ss:$52 sps:$4 sm:$0xff]  }
  0xf2   :  { %2071 = vmatprep.subr.bf16.mxu1 %v4008_v0 }
  0xf3   :  { %1955 = vmatmul.mubr.bf16.gmra.mrb[20].mxu1 %v3821_v19  ;;  %v211_v19 = vld [vmem:[%s5676_s1 + $0x638] sm:$0xff] }
  0xf4   :  { %2534 = vmatmul.mubr.bf16.gmra.mrb[56].mxu0 %v3822_v21  ;;  %1962 = vmatprep.mubr.bf16.mxu1 %v3823_v22  ;;  %v315_v21 = vpack.c.bf16 %v211_v19, %v210_v17  ;;  %v212_v22 = vld [vmem:[%s5676_s1 + $0x640] sm:$0xff]  ;;  %v3912_v19 = vld [vmem:[%s5677_s0 + $0x508] ss:$52 sps:$4 sm:$0xff]  }
  0xf5   :  { %2541 = vmatprep.mubr.bf16.mxu0 %v3825_v23  ;;  %2072 = vmatpush1.bf16.msra.mxu1 %v258_v25  ;;  %v213_v23 = vld [vmem:[%s5676_s1 + $0x648] sm:$0xff] }
  0xf6   :  { %2073 = vmatprep.subr.bf16.mxu1 %v4008_v0  ;;  %v3851_v25 = vld [vmem:[%s5677_s0 + $0x418] ss:$52 sps:$4 sm:$0xff]   ;;  %v316_v31 = vpack.c.bf16 %v213_v23, %v212_v22  ;;  %v3918_v22 = vld [vmem:[%s5677_s0 + $0x570] ss:$52 sps:$4 sm:$0xff]  }
  0xf7   :  { %v3909_v17 = vld [vmem:[%s5677_s0 + $0x50c] ss:$52 sps:$4 sm:$0xff]   ;;  %v3921_v23 = vld [vmem:[%s5677_s0 + $0x5dc] ss:$52 sps:$4 sm:$0xff]  }
  0xf9   :  { %2074 = vmatpush1.bf16.msra.mxu1 %v259_v29  ;;  %v3855_v29 = vld [vmem:[%s5677_s0 + $0x164] ss:$52 sps:$4 sm:$0xff]  }
  0xfa   :  { %2075 = vmatprep.subr.bf16.mxu1 %v4008_v0 }
  0xfb   :  { %1963 = vmatmul.mubr.bf16.gmra.mrb[24].mxu1 %v3827_v33  ;;  %v215_v33 = vld [vmem:[%s5676_s1 + $0x658] sm:$0xff] }
  0xfc   :  { %2542 = vmatmul.mubr.bf16.gmra.mrb[60].mxu0 %v3828_v35  ;;  %1970 = vmatprep.mubr.bf16.mxu1 %v3829_v37  ;;  %v317_v35 = vpack.c.bf16 %v215_v33, %v214_v32  ;;  %v3857_v37 = vld [vmem:[%s5677_s0 + $0x480] ss:$52 sps:$4 sm:$0xff]   ;;  %v3941_v32 = vld [vmem:[%s5677_s0 + $0x3bc] ss:$52 sps:$4 sm:$0xff]   ;;  %v3945_v33 = vld [vmem:[%s5677_s0 + $0x424] ss:$52 sps:$4 sm:$0xff]  }
  0xfd   :  { %2549 = vmatprep.mubr.bf16.mxu0 %v3831_v38  ;;  %2076 = vmatpush1.bf16.msra.mxu1 %v260_v39  ;;  %v3858_v38 = vld [vmem:[%s5677_s0 + $0x160] ss:$52 sps:$4 sm:$0xff]  }
  0xfe   :  { %2077 = vmatprep.subr.bf16.mxu1 %v4008_v0  ;;  %v3859_v39 = vld [vmem:[%s5677_s0 + $0x4ec] ss:$52 sps:$4 sm:$0xff]  }
 0x101   :  { %2078 = vmatpush1.bf16.msra.mxu1 %v261_v43  ;;  %v3864_v43 = vld [vmem:[%s5677_s0 + $0x1c8] ss:$52 sps:$4 sm:$0xff]  }
 0x102   :  { %2079 = vmatprep.subr.bf16.mxu1 %v4008_v0 }
 0x103   :  { %1971 = vmatmul.mubr.bf16.gmra.mrb[28].mxu1 %v3833_v47  ;;  %v3869_v47 = vld [vmem:[%s5677_s0 + $0x550] ss:$52 sps:$4 sm:$0xff]  }
 0x104   :  { %2550 = vmatmul.mubr.bf16.gmra.mrb[64].mxu0 %v3834_v48  ;;  %1978 = vmatprep.mubr.bf16.mxu1 %v3835_v49  ;;  %v3870_v48 = vld [vmem:[%s5677_s0 + $0x230] ss:$52 sps:$4 sm:$0xff]  }
 0x105   :  { %2590 = vmatprep.mubr.bf16.mxu0 %v3839_v51  ;;  %2080 = vmatpush1.bf16.msra.mxu1 %v262_v52  ;;  %v3871_v49 = vld [vmem:[%s5677_s0 + $0x5bc] ss:$52 sps:$4 sm:$0xff]   ;;  %v3875_v52 = vld [vmem:[%s5677_s0 + $0x5b8] ss:$52 sps:$4 sm:$0xff]  }
 0x106   :  { %2081 = vmatprep.subr.bf16.mxu1 %v4008_v0  ;;  %v3873_v51 = vld [vmem:[%s5677_s0 + $0x29c] ss:$52 sps:$4 sm:$0xff]  }
 0x109   :  { %2082 = vmatpush1.bf16.msra.mxu1 %v263_v55  ;;  %v3879_v55 = vld [vmem:[%s5677_s0 + $0x304] ss:$52 sps:$4 sm:$0xff]  }
 0x10a   :  { %3276 = vmatprep.subr.bf16.mxu1 %v4008_v0 }
 0x10b   :  { %1979 = vmatmul.mubr.bf16.gmra.mrb[32].mxu1 %v3840_v59  ;;  %v3883_v59 = vld [vmem:[%s5677_s0 + $0x68c] ss:$52 sps:$4 sm:$0xff]  }
 0x10c   :  { %2591 = vmatmul.mubr.bf16.vlgmr.msra.gmra.mrb[0].mxu0 %v3837_v60  ;;  %1986 = vmatprep.mubr.bf16.mxu1 %v3841_v61  ;;  %v3885_v60 = vld [vmem:[%s5677_s0 + $0x36c] ss:$52 sps:$4 sm:$0xff]   ;;  %v3887_v61 = vld [vmem:[%s5677_s0 + $0x688] ss:$52 sps:$4 sm:$0xff]  }
 0x10d   :  { %2598 = vmatprep.mubr.bf16.mxu0 %v3843_v62  ;;  %3197 = vmatpush3.bf16.msra.mxu0 %v312_v1  ;;  %v3888_v62 = vld [vmem:[%s5677_s0 + $0x368] ss:$52 sps:$4 sm:$0xff]  }
 0x10e   :  { %3198 = vmatprep.subr.bf16.mxu0 %v4009_v9  ;;  %v3891_v1 = vld [vmem:[%s5677_s0 + $0x14] ss:$52 sps:$4 sm:$0xff]  }
 0x111   :  { %3199 = vmatpush3.bf16.msra.mxu0 %v313_v4  ;;  %v3894_v4 = vld [vmem:[%s5677_s0 + $0x3d0] ss:$52 sps:$4 sm:$0xff]  }
 0x112   :  { %3200 = vmatprep.subr.bf16.mxu0 %v4009_v9 }
 0x113   :  { %1987 = vmatmul.mubr.bf16.gmra.mrb[36].mxu1 %v3845_v10  ;;  %v3899_v10 = vld [vmem:[%s5677_s0 + $0x78] ss:$52 sps:$4 sm:$0xff]  }
 0x114   :  { %2599 = vmatmul.mubr.bf16.gmra.mrb[4].mxu0 %v3846_v11  ;;  %1994 = vmatprep.mubr.bf16.mxu1 %v3847_v13  ;;  %v3900_v11 = vld [vmem:[%s5677_s0 + $0x438] ss:$52 sps:$4 sm:$0xff]  }
 0x115   :  { %2606 = vmatprep.mubr.bf16.mxu0 %v3849_v15  ;;  %3201 = vmatpush3.bf16.msra.mxu0 %v314_v16  ;;  %v3901_v13 = vld [vmem:[%s5677_s0 + $0xe4] ss:$52 sps:$4 sm:$0xff]   ;;  %v3906_v15 = vld [vmem:[%s5677_s0 + $0x4a0] ss:$52 sps:$4 sm:$0xff]  }
 0x116   :  { %3202 = vmatprep.subr.bf16.mxu0 %v4009_v9  ;;  %v3907_v16 = vld [vmem:[%s5677_s0 + $0x14c] ss:$52 sps:$4 sm:$0xff]  }
 0x119   :  { %3203 = vmatpush3.bf16.msra.mxu0 %v315_v21  ;;  %v3915_v21 = vld [vmem:[%s5677_s0 + $0x574] ss:$52 sps:$4 sm:$0xff]  }
 0x11a   :  { %3204 = vmatprep.subr.bf16.mxu0 %v4009_v9 }
 0x11b   :  { %1995 = vmatmul.mubr.bf16.gmra.mrb[40].mxu1 %v3851_v25  ;;  %v3924_v25 = vld [vmem:[%s5677_s0 + $0x5d8] ss:$52 sps:$4 sm:$0xff]  }
 0x11c   :  { %2607 = vmatmul.mubr.bf16.gmra.mrb[8].mxu0 %v3852_v26  ;;  %2002 = vmatprep.mubr.bf16.mxu1 %v3853_v28  ;;  %v3927_v26 = vld [vmem:[%s5677_s0 + $0x644] ss:$52 sps:$4 sm:$0xff]   ;;  %v3930_v28 = vld [vmem:[%s5677_s0 + $0x640] ss:$52 sps:$4 sm:$0xff]  }
 0x11d   :  { %2614 = vmatprep.mubr.bf16.mxu0 %v3855_v29  ;;  %3205 = vmatpush3.bf16.msra.mxu0 %v316_v31  ;;  %v3933_v29 = vld [vmem:[%s5677_s0 + $0x6ac] ss:$52 sps:$4 sm:$0xff]   ;;  %v3936_v31 = vld [vmem:[%s5677_s0 + $0x6a8] ss:$52 sps:$4 sm:$0xff]  }
 0x11e   :  { %3206 = vmatprep.subr.bf16.mxu0 %v4009_v9 }
 0x121   :  { %3207 = vmatpush3.bf16.msra.mxu0 %v317_v35  ;;  %v3948_v35 = vld [vmem:[%s5677_s0 + $0x100] ss:$52 sps:$4 sm:$0xff]  }
 0x123   :  { %2003 = vmatmul.mubr.bf16.gmra.mrb[44].mxu1 %v3857_v37  ;;  %v3949_v37 = vld [vmem:[%s5677_s0 + $0x48c] ss:$52 sps:$4 sm:$0xff]  }
 0x124   :  { %2615 = vmatmul.mubr.bf16.gmra.mrb[12].mxu0 %v3858_v38  ;;  %2010 = vmatprep.mubr.bf16.mxu1 %v3859_v39  ;;  %v3951_v38 = vld [vmem:[%s5677_s0 + $0x488] ss:$52 sps:$4 sm:$0xff]  }
 0x125   :  { %2622 = vmatprep.mubr.bf16.mxu0 %v3861_v40  ;;  %v3952_v39 = vld [vmem:[%s5677_s0 + $0x168] ss:$52 sps:$4 sm:$0xff]  }
 0x126   :  { %v3953_v40 = vld [vmem:[%s5677_s0 + $0x4f4] ss:$52 sps:$4 sm:$0xff]  }
 0x12b   :  { %2011 = vmatmul.mubr.bf16.gmra.mrb[48].mxu1 %v3863_v42  ;;  %v3955_v42 = vld [vmem:[%s5677_s0 + $0x4f0] ss:$52 sps:$4 sm:$0xff]  }
 0x12c   :  { %2623 = vmatmul.mubr.bf16.gmra.mrb[16].mxu0 %v3864_v43  ;;  %2018 = vmatprep.mubr.bf16.mxu1 %v3865_v45  ;;  %v3956_v43 = vld [vmem:[%s5677_s0 + $0x1d0] ss:$52 sps:$4 sm:$0xff]  }
 0x12d   :  { %2630 = vmatprep.mubr.bf16.mxu0 %v3867_v46  ;;  %v3957_v45 = vld [vmem:[%s5677_s0 + $0x55c] ss:$52 sps:$4 sm:$0xff]   ;;  %v3959_v46 = vld [vmem:[%s5677_s0 + $0x558] ss:$52 sps:$4 sm:$0xff]  }
 0x133   :  { %2019 = vmatmul.mubr.bf16.gmra.mrb[52].mxu1 %v3869_v47  ;;  %v3960_v47 = vld [vmem:[%s5677_s0 + $0x238] ss:$52 sps:$4 sm:$0xff]  }
 0x134   :  { %2631 = vmatmul.mubr.bf16.gmra.mrb[20].mxu0 %v3870_v48  ;;  %2026 = vmatprep.mubr.bf16.mxu1 %v3871_v49  ;;  %v3961_v48 = vld [vmem:[%s5677_s0 + $0x5c4] ss:$52 sps:$4 sm:$0xff]   ;;  %v3963_v49 = vld [vmem:[%s5677_s0 + $0x5c0] ss:$52 sps:$4 sm:$0xff]  }
 0x135   :  { %2638 = vmatprep.mubr.bf16.mxu0 %v3873_v51  ;;  %v3964_v51 = vld [vmem:[%s5677_s0 + $0x2a0] ss:$52 sps:$4 sm:$0xff]  }
 0x13b   :  { %2027 = vmatmul.mubr.bf16.gmra.mrb[56].mxu1 %v3875_v52  ;;  %v3965_v52 = vld [vmem:[%s5677_s0 + $0x62c] ss:$52 sps:$4 sm:$0xff]  }
 0x13c   :  { %2639 = vmatmul.mubr.bf16.gmra.mrb[24].mxu0 %v3876_v53  ;;  %2034 = vmatprep.mubr.bf16.mxu1 %v3877_v54  ;;  %v3967_v53 = vld [vmem:[%s5677_s0 + $0x628] ss:$52 sps:$4 sm:$0xff]  }
 0x13d   :  { %2646 = vmatprep.mubr.bf16.mxu0 %v3879_v55  ;;  %v3968_v54 = vld [vmem:[%s5677_s0 + $0x308] ss:$52 sps:$4 sm:$0xff]  }
 0x13e   :  { %v3969_v55 = vld [vmem:[%s5677_s0 + $0x694] ss:$52 sps:$4 sm:$0xff]  }
 0x143   :  { %2035 = vmatmul.mubr.bf16.gmra.mrb[60].mxu1 %v3881_v57  ;;  %v3971_v57 = vld [vmem:[%s5677_s0 + $0x690] ss:$52 sps:$4 sm:$0xff]  }
 0x144   :  { %2647 = vmatmul.mubr.bf16.gmra.mrb[28].mxu0 %v3882_v58  ;;  %2042 = vmatprep.mubr.bf16.mxu1 %v3883_v59  ;;  %v3972_v58 = vld [vmem:[%s5677_s0 + $0x370] ss:$52 sps:$4 sm:$0xff]  }
 0x145   :  { %2654 = vmatprep.mubr.bf16.mxu0 %v3885_v60  ;;  %v3975_v59 = vld [vmem:[%s5677_s0 + $0x35c] ss:$52 sps:$4 sm:$0xff]   ;;  %v3973_v60 = vld [vmem:[%s5677_s0 + $0x358] ss:$52 sps:$4 sm:$0xff]  }
 0x14b   :  { %2043 = vmatmul.mubr.bf16.gmra.mrb[64].mxu1 %v3887_v61  ;;  %v3976_v61 = vld [vmem:[%s5677_s0 + $0x3d8] ss:$52 sps:$4 sm:$0xff]  }
 0x14c   :  { %2655 = vmatmul.mubr.bf16.gmra.mrb[32].mxu0 %v3888_v62  ;;  %2083 = vmatprep.mubr.bf16.mxu1 %v3891_v1  ;;  %v3977_v62 = vld [vmem:[%s5677_s0 + $0x3c4] ss:$52 sps:$4 sm:$0xff]   ;;  %v3979_v1 = vld [vmem:[%s5677_s0 + $0x3c0] ss:$52 sps:$4 sm:$0xff]  }
 0x14d   :  { %2662 = vmatprep.mubr.bf16.mxu0 %v3892_v2  ;;  %v3980_v2 = vld [vmem:[%s5677_s0 + $0x440] ss:$52 sps:$4 sm:$0xff]  }
 0x153   :  { %2084 = vmatmul.mubr.bf16.vlgmr.msra.gmra.mrb[0].mxu1 %v3889_v3  ;;  %v3981_v3 = vld [vmem:[%s5677_s0 + $0x42c] ss:$52 sps:$4 sm:$0xff]  }
 0x154   :  { %2663 = vmatmul.mubr.bf16.gmra.mrb[36].mxu0 %v3894_v4  ;;  %3292 = vmatpush1.bf16.msra.mxu1 %v4046_v8  ;;  %v3903_v8 = vld [vmem:[%s5677_s0 + $0x4a4] ss:$52 sps:$4 sm:$0xff]   ;;  %v3983_v4 = vld [vmem:[%s5677_s0 + $0x428] ss:$52 sps:$4 sm:$0xff]  }
 0x155   :  { %2091 = vmatprep.mubr.bf16.mxu1 %v3895_v5  ;;  %2670 = vmatprep.mubr.bf16.mxu0 %v3897_v6  ;;  %v3984_v5 = vld [vmem:[%s5677_s0 + $0x4a8] ss:$52 sps:$4 sm:$0xff]  }
 0x156   :  { %3277 = vmatprep.subr.bf16.mxu1 %v4008_v0  ;;  %v3985_v6 = vld [vmem:[%s5677_s0 + $0x494] ss:$52 sps:$4 sm:$0xff]  }
 0x158   :  { %3293 = vmatpush1.bf16.msra.mxu1 %v4056_v12  ;;  %v3905_v12 = vld [vmem:[%s5677_s0 + $0xe0] ss:$52 sps:$4 sm:$0xff]  }
 0x159   :  { %3278 = vmatprep.subr.bf16.mxu1 %v4008_v0 }
 0x15b   :  { %2092 = vmatmul.mubr.bf16.gmra.mrb[4].mxu1 %v3899_v10  ;;  %v3987_v10 = vld [vmem:[%s5677_s0 + $0x490] ss:$52 sps:$4 sm:$0xff]  }
 0x15c   :  { %2671 = vmatmul.mubr.bf16.gmra.mrb[40].mxu0 %v3900_v11  ;;  %2099 = vmatprep.mubr.bf16.mxu1 %v3901_v13  ;;  %v3988_v11 = vld [vmem:[%s5677_s0 + $0x510] ss:$52 sps:$4 sm:$0xff]  }
 0x15d   :  { %2678 = vmatprep.mubr.bf16.mxu0 %v3903_v8  ;;  %3294 = vmatpush1.bf16.msra.mxu1 %v4073_v18  ;;  %v3911_v18 = vld [vmem:[%s5677_s0 + $0x148] ss:$52 sps:$4 sm:$0xff]   ;;  %v3991_v8 = vld [vmem:[%s5677_s0 + $0x4f8] ss:$52 sps:$4 sm:$0xff]  }
 0x15e   :  { %3279 = vmatprep.subr.bf16.mxu1 %v4008_v0  ;;  %v3989_v13 = vld [vmem:[%s5677_s0 + $0x4fc] ss:$52 sps:$4 sm:$0xff]  }
 0x161   :  { %3295 = vmatpush1.bf16.msra.mxu1 %v4090_v24  ;;  %v3913_v24 = vld [vmem:[%s5677_s0 + $0x1b4] ss:$52 sps:$4 sm:$0xff]  }
 0x162   :  { %3280 = vmatprep.subr.bf16.mxu1 %v4008_v0 }
 0x163   :  { %2100 = vmatmul.mubr.bf16.gmra.mrb[8].mxu1 %v3905_v12  ;;  %v3992_v12 = vld [vmem:[%s5677_s0 + $0x578] ss:$52 sps:$4 sm:$0xff]  }
 0x164   :  { %2679 = vmatmul.mubr.bf16.gmra.mrb[44].mxu0 %v3906_v15  ;;  %2107 = vmatprep.mubr.bf16.mxu1 %v3907_v16  ;;  %v3993_v15 = vld [vmem:[%s5677_s0 + $0x564] ss:$52 sps:$4 sm:$0xff]   ;;  %v3995_v16 = vld [vmem:[%s5677_s0 + $0x560] ss:$52 sps:$4 sm:$0xff]  }
 0x165   :  { %2686 = vmatprep.mubr.bf16.mxu0 %v3909_v17  ;;  %3296 = vmatpush1.bf16.msra.mxu1 %v4107_v30  ;;  %v3917_v30 = vld [vmem:[%s5677_s0 + $0x1b0] ss:$52 sps:$4 sm:$0xff]   ;;  %v3996_v17 = vld [vmem:[%s5677_s0 + $0x5e0] ss:$52 sps:$4 sm:$0xff]  }
 0x166   :  { %3281 = vmatprep.subr.bf16.mxu1 %v4008_v0 }
 0x169   :  { %3297 = vmatpush1.bf16.msra.mxu1 %v4124_v36  ;;  %v3919_v36 = vld [vmem:[%s5677_s0 + $0x21c] ss:$52 sps:$4 sm:$0xff]  }
 0x16a   :  { %3282 = vmatprep.subr.bf16.mxu1 %v4008_v0 }
 0x16b   :  { %2108 = vmatmul.mubr.bf16.gmra.mrb[12].mxu1 %v3911_v18  ;;  %v3997_v18 = vld [vmem:[%s5677_s0 + $0x5cc] ss:$52 sps:$4 sm:$0xff]  }
 0x16c   :  { %2687 = vmatmul.mubr.bf16.gmra.mrb[48].mxu0 %v3912_v19  ;;  %2115 = vmatprep.mubr.bf16.mxu1 %v3913_v24  ;;  %v3999_v19 = vld [vmem:[%s5677_s0 + $0x5c8] ss:$52 sps:$4 sm:$0xff]  }
 0x16d   :  { %2694 = vmatprep.mubr.bf16.mxu0 %v3915_v21  ;;  %3298 = vmatpush1.bf16.msra.mxu1 %v4147_v44  ;;  %v3923_v44 = vld [vmem:[%s5677_s0 + $0x218] ss:$52 sps:$4 sm:$0xff]   ;;  %v4000_v24 = vld [vmem:[%s5677_s0 + $0x648] ss:$52 sps:$4 sm:$0xff]  }
 0x16e   :  { %3283 = vmatprep.subr.bf16.mxu1 %v4008_v0  ;;  %v4001_v21 = vld [vmem:[%s5677_s0 + $0x634] ss:$52 sps:$4 sm:$0xff]  }
 0x171   :  { %3299 = vmatpush1.bf16.msra.mxu1 %v4164_v50  ;;  %v3925_v50 = vld [vmem:[%s5677_s0 + $0x284] ss:$52 sps:$4 sm:$0xff]  }
 0x172   :  { %3284 = vmatprep.subr.bf16.mxu1 %v4008_v0 }
 0x173   :  { %2116 = vmatmul.mubr.bf16.gmra.mrb[16].mxu1 %v3917_v30  ;;  %v4003_v30 = vld [vmem:[%s5677_s0 + $0x630] ss:$52 sps:$4 sm:$0xff]  }
 0x174   :  { %2695 = vmatmul.mubr.bf16.gmra.mrb[52].mxu0 %v3918_v22  ;;  %2123 = vmatprep.mubr.bf16.mxu1 %v3919_v36  ;;  %v4004_v22 = vld [vmem:[%s5677_s0 + $0x6b0] ss:$52 sps:$4 sm:$0xff]  }
 0x175   :  { %2702 = vmatprep.mubr.bf16.mxu0 %v3921_v23  ;;  %3300 = vmatpush1.bf16.msra.mxu1 %v4181_v56  ;;  %v3929_v56 = vld [vmem:[%s5677_s0 + $0x280] ss:$52 sps:$4 sm:$0xff]   ;;  %v4005_v36 = vld [vmem:[%s5677_s0 + $0x69c] ss:$52 sps:$4 sm:$0xff]  }
 0x176   :  { %3285 = vmatprep.subr.bf16.mxu1 %v4008_v0 }
 0x179   :  { %3301 = vmatpush1.bf16.msra.mxu1 %v4201_v63  ;;  %v3931_v63 = vld [vmem:[%s5677_s0 + $0x2ec] ss:$52 sps:$4 sm:$0xff]  }
 0x17a   :  { %3286 = vmatprep.subr.bf16.mxu1 %v4008_v0 }
 0x17b   :  { %2124 = vmatmul.mubr.bf16.gmra.mrb[20].mxu1 %v3923_v44 }
 0x17c   :  { %2703 = vmatmul.mubr.bf16.gmra.mrb[56].mxu0 %v3924_v25  ;;  %2131 = vmatprep.mubr.bf16.mxu1 %v3925_v50 }
 0x17d   :  { %2710 = vmatprep.mubr.bf16.mxu0 %v3927_v26  ;;  %3302 = vmatpush1.bf16.msra.mxu1 %v4221_v7  ;;  %v3935_v7 = vld [vmem:[%s5677_s0 + $0x2e8] ss:$52 sps:$4 sm:$0xff]  }
 0x17e   :  { %3287 = vmatprep.subr.bf16.mxu1 %v4008_v0 }
 0x181   :  { %3303 = vmatpush1.bf16.msra.mxu1 %v4235_v14  ;;  %v3937_v14 = vld [vmem:[%s5677_s0 + $0x354] ss:$52 sps:$4 sm:$0xff]  }
 0x182   :  { %3288 = vmatprep.subr.bf16.mxu1 %v4008_v0 }
 0x183   :  { %2132 = vmatmul.mubr.bf16.gmra.mrb[24].mxu1 %v3929_v56 }
 0x184   :  { %2711 = vmatmul.mubr.bf16.gmra.mrb[60].mxu0 %v3930_v28  ;;  %2139 = vmatprep.mubr.bf16.mxu1 %v3931_v63 }
 0x185   :  { %2718 = vmatprep.mubr.bf16.mxu0 %v3933_v29  ;;  %3304 = vmatpush1.bf16.msra.mxu1 %v4249_v20  ;;  %v3939_v20 = vld [vmem:[%s5677_s0 + $0x350] ss:$52 sps:$4 sm:$0xff]  }
 0x186   :  { %3289 = vmatprep.subr.bf16.mxu1 %v4008_v0 }
 0x189   :  { %3305 = vmatpush1.bf16.msra.mxu1 %v4266_v27  ;;  %v3940_v27 = vld [vmem:[%s5677_s0 + $0x30] ss:$52 sps:$4 sm:$0xff]  }
 0x18a   :  { %3290 = vmatprep.subr.bf16.mxu1 %v4008_v0 }
 0x18b   :  { %2140 = vmatmul.mubr.bf16.gmra.mrb[28].mxu1 %v3935_v7 }
 0x18c   :  { %2719 = vmatmul.mubr.bf16.gmra.mrb[64].mxu0 %v3936_v31  ;;  %2147 = vmatprep.mubr.bf16.mxu1 %v3937_v14 }
 0x18d   :  { %3208 = vmatprep.mubr.msk.bf16.mxu0 %vm4010_vm0, %v4009_v9  ;;  %3306 = vmatpush1.bf16.msra.mxu1 %v4283_v34  ;;  %v3944_v34 = vld [vmem:[%s5677_s0 + $0x98] ss:$52 sps:$4 sm:$0xff]  }
 0x18e   :  { %3291 = vmatprep.subr.bf16.mxu1 %v4008_v0  ;;  %v3943_v0 = vld [vmem:[%s5677_s0 + $0x3b8] ss:$52 sps:$4 sm:$0xff]  }
 0x191   :  { %3307 = vmatpush1.bf16.msra.mxu1 %v4300_v41  ;;  %v3947_v41 = vld [vmem:[%s5677_s0 + $0x420] ss:$52 sps:$4 sm:$0xff]  }
 0x193   :  { %2148 = vmatmul.mubr.bf16.gmra.mrb[32].mxu1 %v3939_v20 }
 0x194   :  { %3209 = vmatmul.mubr.msk.bf16.vlgmr.msra.gmra.mrb[0].mxu0 %vm1661_vm1, %v3940_v27  ;;  %2155 = vmatprep.mubr.bf16.mxu1 %v3941_v32 }
 0x195   :  { %3212 = vmatprep.mubr.msk.bf16.mxu0 %vm4010_vm0, %v4009_v9 }
 0x19b   :  { %2156 = vmatmul.mubr.bf16.gmra.mrb[36].mxu1 %v3943_v0 }
 0x19c   :  { %3213 = vmatmul.mubr.msk.bf16.gmra.mrb[4].mxu0 %vm1661_vm1, %v3944_v34  ;;  %2163 = vmatprep.mubr.bf16.mxu1 %v3945_v33 }
 0x19d   :  { %3216 = vmatprep.mubr.msk.bf16.mxu0 %vm4010_vm0, %v4009_v9 }
 0x1a3   :  { %2164 = vmatmul.mubr.bf16.gmra.mrb[40].mxu1 %v3947_v41 }
 0x1a4   :  { %3217 = vmatmul.mubr.msk.bf16.gmra.mrb[8].mxu0 %vm1661_vm1, %v3948_v35  ;;  %2171 = vmatprep.mubr.bf16.mxu1 %v3949_v37 }
 0x1a5   :  { %3220 = vmatprep.mubr.msk.bf16.mxu0 %vm4010_vm0, %v4009_v9 }
 0x1ab   :  { %2172 = vmatmul.mubr.bf16.gmra.mrb[44].mxu1 %v3951_v38 }
 0x1ac   :  { %3221 = vmatmul.mubr.msk.bf16.gmra.mrb[12].mxu0 %vm1661_vm1, %v3952_v39  ;;  %2179 = vmatprep.mubr.bf16.mxu1 %v3953_v40 }
 0x1ad   :  { %3224 = vmatprep.mubr.msk.bf16.mxu0 %vm4010_vm0, %v4009_v9 }
 0x1b3   :  { %2180 = vmatmul.mubr.bf16.gmra.mrb[48].mxu1 %v3955_v42 }
 0x1b4   :  { %3225 = vmatmul.mubr.msk.bf16.gmra.mrb[16].mxu0 %vm1661_vm1, %v3956_v43  ;;  %2187 = vmatprep.mubr.bf16.mxu1 %v3957_v45 }
 0x1b5   :  { %3228 = vmatprep.mubr.msk.bf16.mxu0 %vm4010_vm0, %v4009_v9 }
 0x1bb   :  { %2188 = vmatmul.mubr.bf16.gmra.mrb[52].mxu1 %v3959_v46 }
 0x1bc   :  { %3229 = vmatmul.mubr.msk.bf16.gmra.mrb[20].mxu0 %vm1661_vm1, %v3960_v47  ;;  %2195 = vmatprep.mubr.bf16.mxu1 %v3961_v48 }
 0x1bd   :  { %3232 = vmatprep.mubr.msk.bf16.mxu0 %vm4010_vm0, %v4009_v9 }
 0x1c3   :  { %2196 = vmatmul.mubr.bf16.gmra.mrb[56].mxu1 %v3963_v49 }
 0x1c4   :  { %3233 = vmatmul.mubr.msk.bf16.gmra.mrb[24].mxu0 %vm1661_vm1, %v3964_v51  ;;  %2203 = vmatprep.mubr.bf16.mxu1 %v3965_v52 }
 0x1c5   :  { %3236 = vmatprep.mubr.msk.bf16.mxu0 %vm4010_vm0, %v4009_v9 }
 0x1cb   :  { %2204 = vmatmul.mubr.bf16.gmra.mrb[60].mxu1 %v3967_v53 }
 0x1cc   :  { %3237 = vmatmul.mubr.msk.bf16.gmra.mrb[28].mxu0 %vm1661_vm1, %v3968_v54  ;;  %2211 = vmatprep.mubr.bf16.mxu1 %v3969_v55 }
 0x1cd   :  { %3240 = vmatprep.mubr.msk.bf16.mxu0 %vm4010_vm0, %v4009_v9 }
 0x1d3   :  { %2212 = vmatmul.mubr.bf16.gmra.mrb[64].mxu1 %v3971_v57 }
 0x1d4   :  { %3241 = vmatmul.mubr.msk.bf16.gmra.mrb[32].mxu0 %vm1661_vm1, %v3972_v58  ;;  %2316 = vmatprep.mubr.bf16.mxu1 %v3975_v59 }
 0x1d5   :  { %3244 = vmatprep.mubr.msk.bf16.mxu0 %vm4010_vm0, %v4009_v9 }
 0x1db   :  { %2317 = vmatmul.mubr.bf16.vlgmr.msra.gmra.mrb[32].mxu1 %v3973_v60 }
 0x1dc   :  { %3245 = vmatmul.mubr.msk.bf16.gmra.mrb[36].mxu0 %vm1661_vm1, %v3976_v61  ;;  %2324 = vmatprep.mubr.bf16.mxu1 %v3977_v62 }
 0x1dd   :  { %3248 = vmatprep.mubr.msk.bf16.mxu0 %vm4010_vm0, %v4009_v9 }
 0x1e3   :  { %2325 = vmatmul.mubr.bf16.gmra.mrb[36].mxu1 %v3979_v1 }
 0x1e4   :  { %3249 = vmatmul.mubr.msk.bf16.gmra.mrb[40].mxu0 %vm1661_vm1, %v3980_v2  ;;  %2332 = vmatprep.mubr.bf16.mxu1 %v3981_v3 }
 0x1e5   :  { %3252 = vmatprep.mubr.msk.bf16.mxu0 %vm4010_vm0, %v4009_v9 }
 0x1eb   :  { %2333 = vmatmul.mubr.bf16.gmra.mrb[40].mxu1 %v3983_v4 }
 0x1ec   :  { %3253 = vmatmul.mubr.msk.bf16.gmra.mrb[44].mxu0 %vm1661_vm1, %v3984_v5  ;;  %2340 = vmatprep.mubr.bf16.mxu1 %v3985_v6 }
 0x1ed   :  { %3256 = vmatprep.mubr.msk.bf16.mxu0 %vm4010_vm0, %v4009_v9 }
 0x1f3   :  { %2341 = vmatmul.mubr.bf16.gmra.mrb[44].mxu1 %v3987_v10 }
 0x1f4   :  { %3257 = vmatmul.mubr.msk.bf16.gmra.mrb[48].mxu0 %vm1661_vm1, %v3988_v11  ;;  %2348 = vmatprep.mubr.bf16.mxu1 %v3989_v13 }
 0x1f5   :  { %3260 = vmatprep.mubr.msk.bf16.mxu0 %vm4010_vm0, %v4009_v9 }
 0x1fb   :  { %2349 = vmatmul.mubr.bf16.gmra.mrb[48].mxu1 %v3991_v8 }
 0x1fc   :  { %3261 = vmatmul.mubr.msk.bf16.gmra.mrb[52].mxu0 %vm1661_vm1, %v3992_v12  ;;  %2356 = vmatprep.mubr.bf16.mxu1 %v3993_v15 }
 0x1fd   :  { %3264 = vmatprep.mubr.msk.bf16.mxu0 %vm4010_vm0, %v4009_v9 }
 0x203   :  { %2357 = vmatmul.mubr.bf16.gmra.mrb[52].mxu1 %v3995_v16 }
 0x204   :  { %3265 = vmatmul.mubr.msk.bf16.gmra.mrb[56].mxu0 %vm1661_vm1, %v3996_v17  ;;  %2364 = vmatprep.mubr.bf16.mxu1 %v3997_v18 }
 0x205   :  { %3268 = vmatprep.mubr.msk.bf16.mxu0 %vm4010_vm0, %v4009_v9 }
 0x20b   :  { %2365 = vmatmul.mubr.bf16.gmra.mrb[56].mxu1 %v3999_v19 }
 0x20c   :  { %3269 = vmatmul.mubr.msk.bf16.gmra.mrb[60].mxu0 %vm1661_vm1, %v4000_v24  ;;  %2372 = vmatprep.mubr.bf16.mxu1 %v4001_v21 }
 0x20d   :  { %3272 = vmatprep.mubr.msk.bf16.mxu0 %vm4010_vm0, %v4009_v9  ;;  %v4007_v9 = vld [vmem:[%s5677_s0 + $0x698] ss:$52 sps:$4 sm:$0xff]  }
 0x213   :  { %2373 = vmatmul.mubr.bf16.gmra.mrb[60].mxu1 %v4003_v30 }
 0x214   :  { %3273 = vmatmul.mubr.msk.bf16.gmra.mrb[64].mxu0 %vm1661_vm1, %v4004_v22  ;;  %2380 = vmatprep.mubr.bf16.mxu1 %v4005_v36 }
 0x21b   :  { %2381 = vmatmul.mubr.bf16.gmra.mrb[64].mxu1 %v4007_v9 }
 0x226   :  { %v2085_v23 = vpop.f32.mrb[0].mxu1 }
 0x227   :  { %v2087_v44 = vpop.f32.mrb[1].mxu1 }
 0x228   :  { %v2088_v25 = vpop.f32.mrb[2].mxu1 }
 0x229   :  { %v2090_v50 = vpop.f32.mrb[3].mxu1 }
 0x22e   :  { %v2093_v26 = vpop.f32.mrb[4].mxu1 }
 0x22f   :  { %v2095_v56 = vpop.f32.mrb[5].mxu1 }
 0x230   :  { %v2096_v28 = vpop.f32.mrb[6].mxu1 }
 0x231   :  { %v2098_v63 = vpop.f32.mrb[7].mxu1 }
 0x236   :  { %v2101_v29 = vpop.f32.mrb[8].mxu1 }
 0x237   :  { %v2103_v7 = vpop.f32.mrb[9].mxu1 }
 0x238   :  { %v2104_v31 = vpop.f32.mrb[10].mxu1 }
 0x239   :  { %v2106_v14 = vpop.f32.mrb[11].mxu1 }
 0x23e   :  { %v2109_v20 = vpop.f32.mrb[12].mxu1 }
 0x23f   :  { %v2111_v27 = vpop.f32.mrb[13].mxu1 }
 0x240   :  { %v2112_v32 = vpop.f32.mrb[14].mxu1 }
 0x241   :  { %v2114_v0 = vpop.f32.mrb[15].mxu1 }
 0x246   :  { %v2117_v34 = vpop.f32.mrb[16].mxu1 }
 0x247   :  { %v2119_v33 = vpop.f32.mrb[17].mxu1 }
 0x248   :  { %v2120_v41 = vpop.f32.mrb[18].mxu1 }
 0x249   :  { %v2122_v35 = vpop.f32.mrb[19].mxu1 }
 0x24e   :  { %v2125_v37 = vpop.f32.mrb[20].mxu1 }
 0x24f   :  { %v2127_v38 = vpop.f32.mrb[21].mxu1 }
 0x250   :  { %v2128_v39 = vpop.f32.mrb[22].mxu1 }
 0x251   :  { %v2130_v40 = vpop.f32.mrb[23].mxu1 }
 0x256   :  { %v2133_v42 = vpop.f32.mrb[24].mxu1 }
 0x257   :  { %v2135_v43 = vpop.f32.mrb[25].mxu1 }
 0x258   :  { %v2136_v45 = vpop.f32.mrb[26].mxu1 }
 0x259   :  { %v2138_v46 = vpop.f32.mrb[27].mxu1 }
 0x25e   :  { %v5534_v47 = vpop.f32.mrb[28].mxu1 }
 0x25f   :  { %v2143_v48 = vpop.f32.mrb[29].mxu1 }
 0x260   :  { %v5536_v49 = vpop.f32.mrb[30].mxu1 }
 0x261   :  { %v2146_v51 = vpop.f32.mrb[31].mxu1 }
 0x267   :  { %v2761_v52 = vpop.f32.mrb[0].mxu0 }
 0x268   :  { %v3308_v53 = vadd.f32 %v2761_v52, %v2085_v23  ;;  %v3210_v54 = vpop.f32.mrb[1].mxu0 }
 0x269   :  { %v2764_v55 = vpop.f32.mrb[2].mxu0 }
 0x26a   :  { %2897 = vst.msk [vmem:[%s5678_s2] sm:$0xff] %vm2896_vm2, %v3308_v53  ;;  %v3309_v57 = vadd.f32 %v2764_v55, %v2088_v25  ;;  %v3211_v58 = vpop.f32.mrb[3].mxu0 }
 0x26c   :  { %2898 = vst.msk [vmem:[%s5678_s2 + $0x8] sm:$0xff] %vm2896_vm2, %v3309_v57 }
 0x26f   :  { %v2769_v59 = vpop.f32.mrb[4].mxu0 }
 0x270   :  { %v3310_v60 = vadd.f32 %v2769_v59, %v2093_v26  ;;  %v3214_v61 = vpop.f32.mrb[5].mxu0 }
 0x271   :  { %v2772_v62 = vpop.f32.mrb[6].mxu0 }
 0x272   :  { %2899 = vst.msk [vmem:[%s5678_s2 + $0x10] sm:$0xff] %vm2896_vm2, %v3310_v60  ;;  %v3311_v1 = vadd.f32 %v2772_v62, %v2096_v28  ;;  %v3215_v2 = vpop.f32.mrb[7].mxu0 }
 0x274   :  { %2900 = vst.msk [vmem:[%s5678_s2 + $0x18] sm:$0xff] %vm2896_vm2, %v3311_v1 }
 0x277   :  { %v2777_v3 = vpop.f32.mrb[8].mxu0 }
 0x278   :  { %v3312_v4 = vadd.f32 %v2777_v3, %v2101_v29  ;;  %v3218_v5 = vpop.f32.mrb[9].mxu0 }
 0x279   :  { %v2780_v6 = vpop.f32.mrb[10].mxu0 }
 0x27a   :  { %2901 = vst.msk [vmem:[%s5678_s2 + $0x20] sm:$0xff] %vm2896_vm2, %v3312_v4  ;;  %v3313_v10 = vadd.f32 %v2780_v6, %v2104_v31  ;;  %v3219_v11 = vpop.f32.mrb[11].mxu0 }
 0x27c   :  { %2902 = vst.msk [vmem:[%s5678_s2 + $0x28] sm:$0xff] %vm2896_vm2, %v3313_v10 }
 0x27f   :  { %v2785_v13 = vpop.f32.mrb[12].mxu0 }
 0x280   :  { %v3314_v8 = vadd.f32 %v2785_v13, %v2109_v20  ;;  %v3222_v12 = vpop.f32.mrb[13].mxu0 }
 0x281   :  { %v2788_v15 = vpop.f32.mrb[14].mxu0 }
 0x282   :  { %2903 = vst.msk [vmem:[%s5678_s2 + $0x30] sm:$0xff] %vm2896_vm2, %v3314_v8  ;;  %v3315_v16 = vadd.f32 %v2788_v15, %v2112_v32  ;;  %v3223_v17 = vpop.f32.mrb[15].mxu0 }
 0x284   :  { %2904 = vst.msk [vmem:[%s5678_s2 + $0x38] sm:$0xff] %vm2896_vm2, %v3315_v16 }
 0x287   :  { %v2793_v18 = vpop.f32.mrb[16].mxu0 }
 0x288   :  { %v3316_v19 = vadd.f32 %v2793_v18, %v2117_v34  ;;  %v3226_v24 = vpop.f32.mrb[17].mxu0 }
 0x289   :  { %v2796_v21 = vpop.f32.mrb[18].mxu0 }
 0x28a   :  { %2905 = vst.msk [vmem:[%s5678_s2 + $0x40] sm:$0xff] %vm2896_vm2, %v3316_v19  ;;  %v3317_v30 = vadd.f32 %v2796_v21, %v2120_v41  ;;  %v3227_v22 = vpop.f32.mrb[19].mxu0 }
 0x28c   :  { %2906 = vst.msk [vmem:[%s5678_s2 + $0x48] sm:$0xff] %vm2896_vm2, %v3317_v30 }
 0x28f   :  { %v2801_v36 = vpop.f32.mrb[20].mxu0 }
 0x290   :  { %v3318_v9 = vadd.f32 %v2801_v36, %v2125_v37  ;;  %v3230_v23 = vpop.f32.mrb[21].mxu0 }
 0x291   :  { %v2804_v44 = vpop.f32.mrb[22].mxu0 }
 0x292   :  { %2907 = vst.msk [vmem:[%s5678_s2 + $0x50] sm:$0xff] %vm2896_vm2, %v3318_v9  ;;  %v3319_v25 = vadd.f32 %v2804_v44, %v2128_v39  ;;  %v3231_v50 = vpop.f32.mrb[23].mxu0 }
 0x294   :  { %2908 = vst.msk [vmem:[%s5678_s2 + $0x58] sm:$0xff] %vm2896_vm2, %v3319_v25 }
 0x297   :  { %v2809_v26 = vpop.f32.mrb[24].mxu0 }
 0x298   :  { %v3320_v56 = vadd.f32 %v2809_v26, %v2133_v42  ;;  %v3234_v28 = vpop.f32.mrb[25].mxu0 }
 0x299   :  { %v2812_v63 = vpop.f32.mrb[26].mxu0 }
 0x29a   :  { %2909 = vst.msk [vmem:[%s5678_s2 + $0x60] sm:$0xff] %vm2896_vm2, %v3320_v56  ;;  %v3321_v29 = vadd.f32 %v2812_v63, %v2136_v45  ;;  %v3235_v7 = vpop.f32.mrb[27].mxu0 }
 0x29c   :  { %2910 = vst.msk [vmem:[%s5678_s2 + $0x68] sm:$0xff] %vm2896_vm2, %v3321_v29 }
 0x29f   :  { %v2817_v31 = vpop.f32.mrb[28].mxu0 }
 0x2a0   :  { %v3322_v14 = vadd.f32 %v2817_v31, %v5534_v47  ;;  %v3238_v20 = vpop.f32.mrb[29].mxu0 }
 0x2a1   :  { %v2820_v27 = vpop.f32.mrb[30].mxu0 }
 0x2a2   :  { %2911 = vst.msk [vmem:[%s5678_s2 + $0x70] sm:$0xff] %vm2896_vm2, %v3322_v14  ;;  %v3323_v32 = vadd.f32 %v2820_v27, %v5536_v49  ;;  %v3239_v0 = vpop.f32.mrb[31].mxu0 }
 0x2a4   :  { %2912 = vst.msk [vmem:[%s5678_s2 + $0x78] sm:$0xff] %vm2896_vm2, %v3323_v32 }
 0x2a7   :  { %v2825_v34 = vpop.f32.mrb[32].mxu0 }
 0x2a8   :  { %v3242_v33 = vpop.f32.mrb[33].mxu0 }
 0x2a9   :  { %v2828_v41 = vpop.f32.mrb[34].mxu0 }
 0x2aa   :  { %v3243_v35 = vpop.f32.mrb[35].mxu0 }
 0x2ae   :  { %v2318_v37 = vpop.f32.mrb[32].mxu1 }
 0x2af   :  { %v3324_v38 = vadd.f32 %v2825_v34, %v2318_v37  ;;  %v2833_v39 = vpop.f32.mrb[36].mxu0  ;;  %v2320_v40 = vpop.f32.mrb[33].mxu1 }
 0x2b0   :  { %v3246_v42 = vpop.f32.mrb[37].mxu0  ;;  %v2321_v43 = vpop.f32.mrb[34].mxu1 }
 0x2b1   :  { %2913 = vst.msk [vmem:[%s5678_s2 + $0x80] sm:$0xff] %vm2896_vm2, %v3324_v38  ;;  %v3325_v45 = vadd.f32 %v2828_v41, %v2321_v43  ;;  %v2836_v46 = vpop.f32.mrb[38].mxu0  ;;  %v2323_v47 = vpop.f32.mrb[35].mxu1 }
 0x2b2   :  { %v3247_v48 = vpop.f32.mrb[39].mxu0 }
 0x2b3   :  { %2914 = vst.msk [vmem:[%s5678_s2 + $0x88] sm:$0xff] %vm2896_vm2, %v3325_v45 }
 0x2b6   :  { %v2326_v49 = vpop.f32.mrb[36].mxu1 }
 0x2b7   :  { %v3326_v51 = vadd.f32 %v2833_v39, %v2326_v49  ;;  %v2841_v52 = vpop.f32.mrb[40].mxu0  ;;  %v2328_v53 = vpop.f32.mrb[37].mxu1 }
 0x2b8   :  { %v3250_v54 = vpop.f32.mrb[41].mxu0  ;;  %v2329_v55 = vpop.f32.mrb[38].mxu1 }
 0x2b9   :  { %2915 = vst.msk [vmem:[%s5678_s2 + $0x90] sm:$0xff] %vm2896_vm2, %v3326_v51  ;;  %v3327_v57 = vadd.f32 %v2836_v46, %v2329_v55  ;;  %v2844_v58 = vpop.f32.mrb[42].mxu0  ;;  %v2331_v59 = vpop.f32.mrb[39].mxu1 }
 0x2ba   :  { %v3251_v60 = vpop.f32.mrb[43].mxu0 }
 0x2bb   :  { %2916 = vst.msk [vmem:[%s5678_s2 + $0x98] sm:$0xff] %vm2896_vm2, %v3327_v57 }
 0x2be   :  { %v2334_v61 = vpop.f32.mrb[40].mxu1 }
 0x2bf   :  { %v3328_v62 = vadd.f32 %v2841_v52, %v2334_v61  ;;  %v2849_v1 = vpop.f32.mrb[44].mxu0  ;;  %v2336_v2 = vpop.f32.mrb[41].mxu1 }
 0x2c0   :  { %v3254_v3 = vpop.f32.mrb[45].mxu0  ;;  %v2337_v4 = vpop.f32.mrb[42].mxu1 }
 0x2c1   :  { %2917 = vst.msk [vmem:[%s5678_s2 + $0xa0] sm:$0xff] %vm2896_vm2, %v3328_v62  ;;  %v3329_v5 = vadd.f32 %v2844_v58, %v2337_v4  ;;  %v2852_v6 = vpop.f32.mrb[46].mxu0  ;;  %v2339_v10 = vpop.f32.mrb[43].mxu1 }
 0x2c2   :  { %v3255_v11 = vpop.f32.mrb[47].mxu0 }
 0x2c3   :  { %2918 = vst.msk [vmem:[%s5678_s2 + $0xa8] sm:$0xff] %vm2896_vm2, %v3329_v5 }
 0x2c6   :  { %v2342_v13 = vpop.f32.mrb[44].mxu1 }
 0x2c7   :  { %v3330_v8 = vadd.f32 %v2849_v1, %v2342_v13  ;;  %v2857_v12 = vpop.f32.mrb[48].mxu0  ;;  %v2344_v15 = vpop.f32.mrb[45].mxu1 }
 0x2c8   :  { %v3258_v16 = vpop.f32.mrb[49].mxu0  ;;  %v2345_v17 = vpop.f32.mrb[46].mxu1 }
 0x2c9   :  { %2919 = vst.msk [vmem:[%s5678_s2 + $0xb0] sm:$0xff] %vm2896_vm2, %v3330_v8  ;;  %v3331_v18 = vadd.f32 %v2852_v6, %v2345_v17  ;;  %v2860_v19 = vpop.f32.mrb[50].mxu0  ;;  %v2347_v24 = vpop.f32.mrb[47].mxu1 }
 0x2ca   :  { %v3259_v21 = vpop.f32.mrb[51].mxu0 }
 0x2cb   :  { %2920 = vst.msk [vmem:[%s5678_s2 + $0xb8] sm:$0xff] %vm2896_vm2, %v3331_v18 }
 0x2ce   :  { %v2350_v30 = vpop.f32.mrb[48].mxu1 }
 0x2cf   :  { %v3332_v22 = vadd.f32 %v2857_v12, %v2350_v30  ;;  %v2865_v36 = vpop.f32.mrb[52].mxu0  ;;  %v2352_v9 = vpop.f32.mrb[49].mxu1 }
 0x2d0   :  { %v3262_v23 = vpop.f32.mrb[53].mxu0  ;;  %v2353_v44 = vpop.f32.mrb[50].mxu1 }
 0x2d1   :  { %2921 = vst.msk [vmem:[%s5678_s2 + $0xc0] sm:$0xff] %vm2896_vm2, %v3332_v22  ;;  %v3333_v25 = vadd.f32 %v2860_v19, %v2353_v44  ;;  %v2868_v50 = vpop.f32.mrb[54].mxu0  ;;  %v2355_v26 = vpop.f32.mrb[51].mxu1 }
 0x2d2   :  { %v3263_v56 = vpop.f32.mrb[55].mxu0 }
 0x2d3   :  { %2922 = vst.msk [vmem:[%s5678_s2 + $0xc8] sm:$0xff] %vm2896_vm2, %v3333_v25 }
 0x2d6   :  { %v2358_v28 = vpop.f32.mrb[52].mxu1 }
 0x2d7   :  { %v3334_v63 = vadd.f32 %v2865_v36, %v2358_v28  ;;  %v2873_v29 = vpop.f32.mrb[56].mxu0  ;;  %v2360_v7 = vpop.f32.mrb[53].mxu1 }
 0x2d8   :  { %v3266_v31 = vpop.f32.mrb[57].mxu0  ;;  %v2361_v14 = vpop.f32.mrb[54].mxu1 }
 0x2d9   :  { %2923 = vst.msk [vmem:[%s5678_s2 + $0xd0] sm:$0xff] %vm2896_vm2, %v3334_v63  ;;  %v3335_v20 = vadd.f32 %v2868_v50, %v2361_v14  ;;  %v2876_v27 = vpop.f32.mrb[58].mxu0  ;;  %v2363_v32 = vpop.f32.mrb[55].mxu1 }
 0x2da   :  { %v3267_v0 = vpop.f32.mrb[59].mxu0 }
 0x2db   :  { %2924 = vst.msk [vmem:[%s5678_s2 + $0xd8] sm:$0xff] %vm2896_vm2, %v3335_v20 }
 0x2de   :  { %v2366_v34 = vpop.f32.mrb[56].mxu1 }
 0x2df   :  { %v3336_v33 = vadd.f32 %v2873_v29, %v2366_v34  ;;  %v2881_v41 = vpop.f32.mrb[60].mxu0  ;;  %v2368_v35 = vpop.f32.mrb[57].mxu1 }
 0x2e0   :  { %v3270_v37 = vpop.f32.mrb[61].mxu0  ;;  %v2369_v38 = vpop.f32.mrb[58].mxu1 }
 0x2e1   :  { %2925 = vst.msk [vmem:[%s5678_s2 + $0xe0] sm:$0xff] %vm2896_vm2, %v3336_v33  ;;  %v3337_v39 = vadd.f32 %v2876_v27, %v2369_v38  ;;  %v2884_v40 = vpop.f32.mrb[62].mxu0  ;;  %v2371_v42 = vpop.f32.mrb[59].mxu1 }
 0x2e2   :  { %v3271_v43 = vpop.f32.mrb[63].mxu0 }
 0x2e3   :  { %2926 = vst.msk [vmem:[%s5678_s2 + $0xe8] sm:$0xff] %vm2896_vm2, %v3337_v39 }
 0x2e6   :  { %v2374_v45 = vpop.f32.mrb[60].mxu1 }
 0x2e7   :  { %v3338_v46 = vadd.f32 %v2881_v41, %v2374_v45  ;;  %v2889_v47 = vpop.f32.mrb[64].mxu0  ;;  %v2376_v48 = vpop.f32.mrb[61].mxu1 }
 0x2e8   :  { %v3274_v49 = vpop.f32.mrb[65].mxu0  ;;  %v2377_v51 = vpop.f32.mrb[62].mxu1 }
 0x2e9   :  { %2927 = vst.msk [vmem:[%s5678_s2 + $0xf0] sm:$0xff] %vm2896_vm2, %v3338_v46  ;;  %v3339_v52 = vadd.f32 %v2884_v40, %v2377_v51  ;;  %v2892_v53 = vpop.f32.mrb[66].mxu0  ;;  %v2379_v54 = vpop.f32.mrb[63].mxu1 }
 0x2ea   :  { %v3275_v55 = vpop.f32.mrb[67].mxu0 }
 0x2eb   :  { %2928 = vst.msk [vmem:[%s5678_s2 + $0xf8] sm:$0xff] %vm2896_vm2, %v3339_v52 }
 0x2ee   :  { %v2382_v57 = vpop.f32.mrb[64].mxu1 }
 0x2ef   :  { %v3340_v58 = vadd.f32 %v2889_v47, %v2382_v57  ;;  %v2384_v59 = vpop.f32.mrb[65].mxu1 }
 0x2f0   :  { %v2385_v60 = vpop.f32.mrb[66].mxu1 }
 0x2f1   :  { %2929 = vst.msk [vmem:[%s5678_s2 + $0x100] sm:$0xff] %vm2896_vm2, %v3340_v58  ;;  %v3341_v61 = vadd.f32 %v2892_v53, %v2385_v60  ;;  %v2387_v62 = vpop.f32.mrb[67].mxu1 }
 0x2f3   :  { %2930 = vst.msk [vmem:[%s5678_s2 + $0x108] sm:$0xff] %vm2896_vm2, %v3341_v61 }

</bundles_post_ra>
